<compile_context>
chip_gen: v5e
topology: v5e:2x2
jax: 0.10.0
libtpu: 0.0.40
codegen_flags: <defaults>
</compile_context>

<pallas_src>
import functools

import jax
import jax.numpy as jnp
from jax.experimental import pallas as pl
from jax.experimental.pallas import tpu as pltpu


def _pvse_kernel(img_ref, txt_ref, ni_c_ref, ni_r_ref, nt_c_ref, nt_r_ref,
                 imgr_ref, txtr_ref, out_ref, *,
                 B, K, D, margin, gamma, max_violation, reduction):
    f32 = jnp.float32
    # (B,D) x (B,D) contracting dim 1 of both -> (B,B)  (NT matmul on the MXU)
    dn = (((1,), (1,)), ((), ()))

    def gram(a, b):
        return jax.lax.dot_general(a, b, dn, preferred_element_type=f32)

    row = jax.lax.broadcasted_iota(jnp.int32, (B, B), 0)
    col = jax.lax.broadcasted_iota(jnp.int32, (B, B), 1)
    eye = row == col

    def rbf_rows(S, n_rows, n_cols, zero_diag=False):
        # Gram identity: dist2 = ||a||^2 + ||b||^2 - 2 a.b ; clamp rounding
        dist2 = jnp.maximum(n_rows + n_cols - 2.0 * S, 0.0)
        e = jnp.exp(-gamma * jnp.sqrt(dist2))
        if zero_diag:
            e = jnp.where(eye, 0.0, e)          # exact diag handled separately
        return jnp.sum(e, axis=1, keepdims=True)  # (B,1) per-row partials

    # ---- fused pooled-similarity max + img-txt MMD cross term -------------
    pooled = None
    cross_rows = jnp.zeros((B, 1), f32)
    for ki in range(K):
        a = img_ref[ki]                          # (B, D)
        na = ni_c_ref[ki]                        # (B, 1)
        for kj in range(K):
            S = gram(a, txt_ref[kj])             # (B, B) f32
            pooled = S if pooled is None else jnp.maximum(pooled, S)
            cross_rows = cross_rows + rbf_rows(S, na, nt_r_ref[kj])
    cross = jnp.sum(cross_rows)

    # ---- self MMD terms: block symmetry (ki<=kj) + exact diagonal ----------
    def self_rbf(x_ref, nc_ref, nr_ref):
        rows = jnp.zeros((B, 1), f32)
        diag_exact = 0.0
        for ki in range(K):
            a = x_ref[ki]
            na = nc_ref[ki]
            for kj in range(ki, K):
                S = gram(a, x_ref[kj])
                if ki == kj:
                    rows = rows + rbf_rows(S, na, nr_ref[kj], zero_diag=True)
                    diag_exact += float(B)       # exp(0) = 1 on the diagonal
                else:
                    rows = rows + 2.0 * rbf_rows(S, na, nr_ref[kj])
        return jnp.sum(rows) + diag_exact

    mmd_tot = (self_rbf(img_ref, ni_c_ref, ni_r_ref)
               - 2.0 * cross
               + self_rbf(txt_ref, nt_c_ref, nt_r_ref))
    N = B * K
    mmd = mmd_tot / float(N * N) if reduction == 'mean' else mmd_tot

    # ---- triplet ranking loss ----------------------------------------------
    diag_only = jnp.where(eye, pooled, 0.0)
    d1 = jnp.sum(diag_only, axis=1, keepdims=True)   # (B, 1) diag[i]
    d2 = jnp.sum(diag_only, axis=0, keepdims=True)   # (1, B) diag[j]

    i2t = jnp.where(eye, 0.0, jnp.maximum(margin + pooled - d1, 0.0))
    t2i = jnp.where(eye, 0.0, jnp.maximum(margin + pooled - d2, 0.0))
    if max_violation:
        i2t = jnp.max(i2t, axis=1, keepdims=True)
        t2i = jnp.max(t2i, axis=0, keepdims=True)
    if reduction == 'mean':
        ranking = jnp.mean(i2t) + jnp.mean(t2i)
    else:
        ranking = jnp.sum(i2t) + jnp.sum(t2i)

    # ---- diversity loss: pairwise lane-reductions, rsqrt norm scaling ------
    def div_one(x_ref):
        xs = [x_ref[k].astype(f32) for k in range(K)]              # (B, D) each
        inv = [jax.lax.rsqrt(
                   jnp.maximum(jnp.sum(x * x, axis=-1, keepdims=True), 1e-24))
               for x in xs]                                         # 1/max(||x||,1e-12)
        acc = jnp.zeros((B, 1), f32)
        for k in range(K):
            for l in range(k + 1, K):
                s = jnp.sum(xs[k] * xs[l], axis=-1, keepdims=True)  # (B, 1)
                g = s * inv[k] * inv[l]
                acc = acc + 2.0 * (g * g)        # off-diag Gram is symmetric
        per_b = jnp.sqrt(acc) / float(K * K)
        tot = jnp.sum(per_b)
        return tot / float(B) if reduction == 'mean' else tot

    div = div_one(imgr_ref) + div_one(txtr_ref)

    out_ref[0] = ranking
    out_ref[1] = div
    out_ref[2] = mmd


def pvse_loss(img, txt, img_r, txt_r, *, margin=1.0, mmd_weight=0.0,
              div_weight=0.0, max_violation=False, reduction='mean',
              gamma=0.5, matmul_dtype=jnp.bfloat16):
    """JAX/Pallas equivalent of PVSELoss.forward (num_embeds = img.shape[1]).

    matmul_dtype: operand dtype for the MXU Gram matmuls.  bf16 is MXU-native
    on v5e/v6e/v7x and is the default; pass jnp.float32 for bit-exact pooled
    scores (e.g. margin-critical max_violation training) at ~3-4x MXU cost.
    """
    if reduction not in ('mean', 'sum'):
        raise ValueError(f"reduction must be 'mean' or 'sum', got {reduction!r}")

    B, K, D = img.shape
    kernel = functools.partial(
        _pvse_kernel, B=B, K=K, D=D, margin=float(margin), gamma=float(gamma),
        max_violation=max_violation, reduction=reduction)

    # (K, B, D) matmul operands; every Gram block is an NT dot_general,
    # so no (K, D, B) duplicates are ever built.
    img_kbd = jnp.transpose(img, (1, 0, 2)).astype(matmul_dtype)
    txt_kbd = jnp.transpose(txt, (1, 0, 2)).astype(matmul_dtype)

    # Squared norms from the same rounded operands (so Gram diagonals ~cancel),
    # in both (B,1)/(1,B) layouts -> no in-kernel transposes.  Tiny arrays.
    def sqnorm(x):
        xf = x.astype(jnp.float32)
        return jnp.sum(xf * xf, axis=-1)            # (K, B)
    ni = sqnorm(img_kbd)
    nt = sqnorm(txt_kbd)
    ni_col, ni_row = ni[:, :, None], ni[:, None, :]
    nt_col, nt_row = nt[:, :, None], nt[:, None, :]

    # Residuals stay in their native dtype (no wrapper f32 upcast).
    imgr_kbd = jnp.transpose(img_r, (1, 0, 2))
    txtr_kbd = jnp.transpose(txt_r, (1, 0, 2))

    mm_itemsize = jnp.dtype(matmul_dtype).itemsize
    res_itemsize = jnp.dtype(img_r.dtype).itemsize
    in_bytes = (2 * K * B * D * mm_itemsize          # embeddings
                + 4 * K * B * 4                      # norms, both layouts
                + 2 * K * B * D * res_itemsize)      # residuals
    work_bytes = 8 * B * B * 4 + 4 * K * B * D * 4   # pooled + block temps + f32 slices
    vmem_limit = int(min(64 * 2**20, max(32 * 2**20, 2 * (in_bytes + work_bytes))))

    n_gram = K * K + K * (K + 1)                     # cross + two symmetric self terms
    flops = (2 * B * B * D * n_gram                  # MXU Gram blocks
             + 2 * 2 * B * D * (K * (K - 1) // 2)    # diversity pairwise dots
             + 2 * 2 * B * K * D)                    # diversity norms
    transcend = 2 * B * B * n_gram + 2 * B * K + 2 * B
    cost = pl.CostEstimate(flops=int(flops), transcendentals=int(transcend),
                           bytes_accessed=int(in_bytes + 3 * 4))

    out = pl.pallas_call(
        kernel,
        out_shape=jax.ShapeDtypeStruct((3,), jnp.float32),
        in_specs=[pl.BlockSpec(memory_space=pltpu.MemorySpace.VMEM)
                  for _ in range(8)],
        out_specs=pl.BlockSpec(memory_space=pltpu.MemorySpace.SMEM),
        compiler_params=pltpu.CompilerParams(vmem_limit_bytes=vmem_limit),
        cost_estimate=cost,
    )(img_kbd, txt_kbd, ni_col, ni_row, nt_col, nt_row, imgr_kbd, txtr_kbd)

    ranking, div, mmd = out[0], out[1], out[2]
    loss = ranking
    losses = {'ranking_loss': ranking}
    if K > 1 and div_weight > 0.0:
        loss = loss + div_weight * div
        losses['div_loss'] = div
    if K > 1 and mmd_weight > 0.0:
        loss = loss + mmd_weight * mmd
        losses['mmd_loss'] = mmd
    return loss, losses


# ---------------- pure-JAX reference (mirrors the PyTorch code) ----------------
def pvse_loss_ref(img, txt, img_r, txt_r, *, margin, mmd_weight, div_weight,
                  max_violation=False, reduction='mean'):
    B, K, D = img.shape
    x = img.reshape(-1, D)
    y = txt.reshape(-1, D)
    scores_full = x @ y.T
    scores = scores_full.reshape(B, K, B, K).max(axis=(1, 3))
    diag = jnp.diag(scores)
    eye = jnp.eye(B, dtype=bool)

    def trip(A, Bv, ax):
        l = jnp.maximum(margin + A - Bv, 0.0)
        l = jnp.where(eye, 0.0, l)
        if max_violation:
            l = l.max(ax)
        return l.mean() if reduction == 'mean' else l.sum()

    ranking = trip(scores, diag[:, None], 1) + trip(scores, diag[None, :], 0)

    def div_one(z):
        zn = z / jnp.maximum(jnp.linalg.norm(z, axis=-1, keepdims=True), 1e-12)
        g = jnp.einsum('bkd,bld->bkl', zn, zn)
        g = g * (1.0 - jnp.eye(K))[None]
        l = jnp.sqrt(jnp.sum(g * g, axis=(1, 2))) / K ** 2
        return l.mean() if reduction == 'mean' else l.sum()

    div = div_one(img_r) + div_one(txt_r)

    def rbf(a, b, gamma):
        d = jnp.sqrt(jnp.sum((a[:, None, :] - b[None, :, :]) ** 2, axis=-1))
        return jnp.exp(-gamma * d)

    m = rbf(x, x, 0.5) - 2.0 * rbf(x, y, 0.5) + rbf(y, y, 0.5)
    mmd = m.mean() if reduction == 'mean' else m.sum()

    loss = ranking
    losses = {'ranking_loss': ranking}
    if K > 1 and div_weight > 0.0:
        loss = loss + div_weight * div
        losses['div_loss'] = div
    if K > 1 and mmd_weight > 0.0:
        loss = loss + mmd_weight * mmd
        losses['mmd_loss'] = mmd
    return loss, losses


if __name__ == "__main__":
    B, K, D = 4, 2, 32
    margin, mmd_weight, div_weight = 0.1, 0.01, 0.1

    key = jax.random.PRNGKey(0)
    k1, k2, k3, k4 = jax.random.split(key, 4)
    img = jax.random.normal(k1, (B, K, D), jnp.float32)
    txt = jax.random.normal(k2, (B, K, D), jnp.float32)
    # cosine_sim assumes l2-normalized embeddings (the PVSE encoder normalizes)
    img = img / jnp.linalg.norm(img, axis=-1, keepdims=True)
    txt = txt / jnp.linalg.norm(txt, axis=-1, keepdims=True)
    img_r = jax.random.normal(k3, (B, K, D), jnp.float32)
    txt_r = jax.random.normal(k4, (B, K, D), jnp.float32)

    loss, losses = pvse_loss(img, txt, img_r, txt_r, margin=margin,
                             mmd_weight=mmd_weight, div_weight=div_weight)
    jax.block_until_ready(loss)

    loss_ref, losses_ref = pvse_loss_ref(img, txt, img_r, txt_r, margin=margin,
                                         mmd_weight=mmd_weight,
                                         div_weight=div_weight)
    assert bool(jnp.isfinite(loss))
    assert jnp.allclose(loss, loss_ref, rtol=5e-2, atol=5e-3), (loss, loss_ref)
    for name in losses_ref:
        assert jnp.allclose(losses[name], losses_ref[name],
                            rtol=5e-2, atol=5e-3), (name, losses[name],
                                                    losses_ref[name])
    print("KERNEL_OK")
</pallas_src>

<mosaic_0001>
module attributes {stable_mosaic.version = 11 : i64} {
  func.func @_pvse_kernel(%arg0: memref<2x4x32xbf16, #tpu.memory_space<vmem>>, %arg1: memref<2x4x32xbf16, #tpu.memory_space<vmem>>, %arg2: memref<2x4x1xf32, #tpu.memory_space<vmem>>, %arg3: memref<2x1x4xf32, #tpu.memory_space<vmem>>, %arg4: memref<2x4x1xf32, #tpu.memory_space<vmem>>, %arg5: memref<2x1x4xf32, #tpu.memory_space<vmem>>, %arg6: memref<2x4x32xf32, #tpu.memory_space<vmem>>, %arg7: memref<2x4x32xf32, #tpu.memory_space<vmem>>, %arg8: memref<3xf32, #tpu.memory_space<smem>>) attributes {dimension_semantics = [], scalar_prefetch = 0 : i64, scratch_operands = 0 : i64, tpu.core_type = #tpu.core_type<tc>} {
    %0 = tpu.iota {dimensions = array<i32: 0>} : vector<4x4xi32>
    %1 = tpu.iota {dimensions = array<i32: 1>} : vector<4x4xi32>
    %2 = arith.cmpi eq, %0, %1 : vector<4x4xi32>
    %cst = arith.constant 0.000000e+00 : f32
    %3 = vector.broadcast %cst : f32 to vector<4x1xf32>
    %c0 = arith.constant 0 : index
    %c0_0 = arith.constant 0 : index
    %c0_1 = arith.constant 0 : index
    %4 = vector.load %arg0[%c0, %c0_0, %c0_1] : memref<2x4x32xbf16, #tpu.memory_space<vmem>>, vector<1x4x32xbf16>
    %5 = vector.shape_cast %4 : vector<1x4x32xbf16> to vector<4x32xbf16>
    %c0_2 = arith.constant 0 : index
    %c0_3 = arith.constant 0 : index
    %c0_4 = arith.constant 0 : index
    %6 = vector.load %arg2[%c0_2, %c0_3, %c0_4] : memref<2x4x1xf32, #tpu.memory_space<vmem>>, vector<1x4x1xf32>
    %7 = vector.shape_cast %6 : vector<1x4x1xf32> to vector<4x1xf32>
    %c0_5 = arith.constant 0 : index
    %c0_6 = arith.constant 0 : index
    %c0_7 = arith.constant 0 : index
    %8 = vector.load %arg1[%c0_5, %c0_6, %c0_7] : memref<2x4x32xbf16, #tpu.memory_space<vmem>>, vector<1x4x32xbf16>
    %9 = vector.shape_cast %8 : vector<1x4x32xbf16> to vector<4x32xbf16>
    %cst_8 = arith.constant dense<0.000000e+00> : vector<4x4xf32>
    %10 = tpu.matmul %5, %9, %cst_8 {dimension_numbers = #tpu.dot_dimension_numbers<[1], [1], [0], [0], [0, 0, 1, 0], [], []>} : vector<4x32xbf16>, vector<4x32xbf16>, vector<4x4xf32> -> vector<4x4xf32>
    %c0_9 = arith.constant 0 : index
    %c0_10 = arith.constant 0 : index
    %c0_11 = arith.constant 0 : index
    %11 = vector.load %arg5[%c0_9, %c0_10, %c0_11] : memref<2x1x4xf32, #tpu.memory_space<vmem>>, vector<1x1x4xf32>
    %12 = vector.shape_cast %11 : vector<1x1x4xf32> to vector<1x4xf32>
    %13 = vector.broadcast %7 : vector<4x1xf32> to vector<4x4xf32>
    %14 = vector.broadcast %12 : vector<1x4xf32> to vector<4x4xf32>
    %15 = arith.addf %13, %14 : vector<4x4xf32>
    %cst_12 = arith.constant 2.000000e+00 : f32
    %16 = vector.broadcast %cst_12 : f32 to vector<4x4xf32>
    %17 = arith.mulf %16, %10 : vector<4x4xf32>
    %18 = arith.subf %15, %17 : vector<4x4xf32>
    %cst_13 = arith.constant 0.000000e+00 : f32
    %19 = vector.broadcast %cst_13 : f32 to vector<4x4xf32>
    %20 = arith.maximumf %18, %19 : vector<4x4xf32>
    %21 = math.sqrt %20 : vector<4x4xf32>
    %cst_14 = arith.constant -5.000000e-01 : f32
    %22 = vector.broadcast %cst_14 : f32 to vector<4x4xf32>
    %23 = arith.mulf %22, %21 : vector<4x4xf32>
    %24 = math.exp %23 : vector<4x4xf32>
    %cst_15 = arith.constant dense<0.000000e+00> : vector<4xf32>
    %25 = vector.multi_reduction <add>, %24, %cst_15 [1] : vector<4x4xf32> to vector<4xf32>
    %26 = vector.shape_cast %25 : vector<4xf32> to vector<4x1xf32>
    %27 = arith.addf %3, %26 : vector<4x1xf32>
    %c1 = arith.constant 1 : index
    %c0_16 = arith.constant 0 : index
    %c0_17 = arith.constant 0 : index
    %28 = vector.load %arg1[%c1, %c0_16, %c0_17] : memref<2x4x32xbf16, #tpu.memory_space<vmem>>, vector<1x4x32xbf16>
    %29 = vector.shape_cast %28 : vector<1x4x32xbf16> to vector<4x32xbf16>
    %cst_18 = arith.constant dense<0.000000e+00> : vector<4x4xf32>
    %30 = tpu.matmul %5, %29, %cst_18 {dimension_numbers = #tpu.dot_dimension_numbers<[1], [1], [0], [0], [0, 0, 1, 0], [], []>} : vector<4x32xbf16>, vector<4x32xbf16>, vector<4x4xf32> -> vector<4x4xf32>
    %31 = arith.maximumf %10, %30 : vector<4x4xf32>
    %c1_19 = arith.constant 1 : index
    %c0_20 = arith.constant 0 : index
    %c0_21 = arith.constant 0 : index
    %32 = vector.load %arg5[%c1_19, %c0_20, %c0_21] : memref<2x1x4xf32, #tpu.memory_space<vmem>>, vector<1x1x4xf32>
    %33 = vector.shape_cast %32 : vector<1x1x4xf32> to vector<1x4xf32>
    %34 = vector.broadcast %7 : vector<4x1xf32> to vector<4x4xf32>
    %35 = vector.broadcast %33 : vector<1x4xf32> to vector<4x4xf32>
    %36 = arith.addf %34, %35 : vector<4x4xf32>
    %cst_22 = arith.constant 2.000000e+00 : f32
    %37 = vector.broadcast %cst_22 : f32 to vector<4x4xf32>
    %38 = arith.mulf %37, %30 : vector<4x4xf32>
    %39 = arith.subf %36, %38 : vector<4x4xf32>
    %cst_23 = arith.constant 0.000000e+00 : f32
    %40 = vector.broadcast %cst_23 : f32 to vector<4x4xf32>
    %41 = arith.maximumf %39, %40 : vector<4x4xf32>
    %42 = math.sqrt %41 : vector<4x4xf32>
    %cst_24 = arith.constant -5.000000e-01 : f32
    %43 = vector.broadcast %cst_24 : f32 to vector<4x4xf32>
    %44 = arith.mulf %43, %42 : vector<4x4xf32>
    %45 = math.exp %44 : vector<4x4xf32>
    %cst_25 = arith.constant dense<0.000000e+00> : vector<4xf32>
    %46 = vector.multi_reduction <add>, %45, %cst_25 [1] : vector<4x4xf32> to vector<4xf32>
    %47 = vector.shape_cast %46 : vector<4xf32> to vector<4x1xf32>
    %48 = arith.addf %27, %47 : vector<4x1xf32>
    %c1_26 = arith.constant 1 : index
    %c0_27 = arith.constant 0 : index
    %c0_28 = arith.constant 0 : index
    %49 = vector.load %arg0[%c1_26, %c0_27, %c0_28] : memref<2x4x32xbf16, #tpu.memory_space<vmem>>, vector<1x4x32xbf16>
    %50 = vector.shape_cast %49 : vector<1x4x32xbf16> to vector<4x32xbf16>
    %c1_29 = arith.constant 1 : index
    %c0_30 = arith.constant 0 : index
    %c0_31 = arith.constant 0 : index
    %51 = vector.load %arg2[%c1_29, %c0_30, %c0_31] : memref<2x4x1xf32, #tpu.memory_space<vmem>>, vector<1x4x1xf32>
    %52 = vector.shape_cast %51 : vector<1x4x1xf32> to vector<4x1xf32>
    %c0_32 = arith.constant 0 : index
    %c0_33 = arith.constant 0 : index
    %c0_34 = arith.constant 0 : index
    %53 = vector.load %arg1[%c0_32, %c0_33, %c0_34] : memref<2x4x32xbf16, #tpu.memory_space<vmem>>, vector<1x4x32xbf16>
    %54 = vector.shape_cast %53 : vector<1x4x32xbf16> to vector<4x32xbf16>
    %cst_35 = arith.constant dense<0.000000e+00> : vector<4x4xf32>
    %55 = tpu.matmul %50, %54, %cst_35 {dimension_numbers = #tpu.dot_dimension_numbers<[1], [1], [0], [0], [0, 0, 1, 0], [], []>} : vector<4x32xbf16>, vector<4x32xbf16>, vector<4x4xf32> -> vector<4x4xf32>
    %56 = arith.maximumf %31, %55 : vector<4x4xf32>
    %c0_36 = arith.constant 0 : index
    %c0_37 = arith.constant 0 : index
    %c0_38 = arith.constant 0 : index
    %57 = vector.load %arg5[%c0_36, %c0_37, %c0_38] : memref<2x1x4xf32, #tpu.memory_space<vmem>>, vector<1x1x4xf32>
    %58 = vector.shape_cast %57 : vector<1x1x4xf32> to vector<1x4xf32>
    %59 = vector.broadcast %52 : vector<4x1xf32> to vector<4x4xf32>
    %60 = vector.broadcast %58 : vector<1x4xf32> to vector<4x4xf32>
    %61 = arith.addf %59, %60 : vector<4x4xf32>
    %cst_39 = arith.constant 2.000000e+00 : f32
    %62 = vector.broadcast %cst_39 : f32 to vector<4x4xf32>
    %63 = arith.mulf %62, %55 : vector<4x4xf32>
    %64 = arith.subf %61, %63 : vector<4x4xf32>
    %cst_40 = arith.constant 0.000000e+00 : f32
    %65 = vector.broadcast %cst_40 : f32 to vector<4x4xf32>
    %66 = arith.maximumf %64, %65 : vector<4x4xf32>
    %67 = math.sqrt %66 : vector<4x4xf32>
    %cst_41 = arith.constant -5.000000e-01 : f32
    %68 = vector.broadcast %cst_41 : f32 to vector<4x4xf32>
    %69 = arith.mulf %68, %67 : vector<4x4xf32>
    %70 = math.exp %69 : vector<4x4xf32>
    %cst_42 = arith.constant dense<0.000000e+00> : vector<4xf32>
    %71 = vector.multi_reduction <add>, %70, %cst_42 [1] : vector<4x4xf32> to vector<4xf32>
    %72 = vector.shape_cast %71 : vector<4xf32> to vector<4x1xf32>
    %73 = arith.addf %48, %72 : vector<4x1xf32>
    %c1_43 = arith.constant 1 : index
    %c0_44 = arith.constant 0 : index
    %c0_45 = arith.constant 0 : index
    %74 = vector.load %arg1[%c1_43, %c0_44, %c0_45] : memref<2x4x32xbf16, #tpu.memory_space<vmem>>, vector<1x4x32xbf16>
    %75 = vector.shape_cast %74 : vector<1x4x32xbf16> to vector<4x32xbf16>
    %cst_46 = arith.constant dense<0.000000e+00> : vector<4x4xf32>
    %76 = tpu.matmul %50, %75, %cst_46 {dimension_numbers = #tpu.dot_dimension_numbers<[1], [1], [0], [0], [0, 0, 1, 0], [], []>} : vector<4x32xbf16>, vector<4x32xbf16>, vector<4x4xf32> -> vector<4x4xf32>
    %77 = arith.maximumf %56, %76 : vector<4x4xf32>
    %c1_47 = arith.constant 1 : index
    %c0_48 = arith.constant 0 : index
    %c0_49 = arith.constant 0 : index
    %78 = vector.load %arg5[%c1_47, %c0_48, %c0_49] : memref<2x1x4xf32, #tpu.memory_space<vmem>>, vector<1x1x4xf32>
    %79 = vector.shape_cast %78 : vector<1x1x4xf32> to vector<1x4xf32>
    %80 = vector.broadcast %52 : vector<4x1xf32> to vector<4x4xf32>
    %81 = vector.broadcast %79 : vector<1x4xf32> to vector<4x4xf32>
    %82 = arith.addf %80, %81 : vector<4x4xf32>
    %cst_50 = arith.constant 2.000000e+00 : f32
    %83 = vector.broadcast %cst_50 : f32 to vector<4x4xf32>
    %84 = arith.mulf %83, %76 : vector<4x4xf32>
    %85 = arith.subf %82, %84 : vector<4x4xf32>
    %cst_51 = arith.constant 0.000000e+00 : f32
    %86 = vector.broadcast %cst_51 : f32 to vector<4x4xf32>
    %87 = arith.maximumf %85, %86 : vector<4x4xf32>
    %88 = math.sqrt %87 : vector<4x4xf32>
    %cst_52 = arith.constant -5.000000e-01 : f32
    %89 = vector.broadcast %cst_52 : f32 to vector<4x4xf32>
    %90 = arith.mulf %89, %88 : vector<4x4xf32>
    %91 = math.exp %90 : vector<4x4xf32>
    %cst_53 = arith.constant dense<0.000000e+00> : vector<4xf32>
    %92 = vector.multi_reduction <add>, %91, %cst_53 [1] : vector<4x4xf32> to vector<4xf32>
    %93 = vector.shape_cast %92 : vector<4xf32> to vector<4x1xf32>
    %94 = arith.addf %73, %93 : vector<4x1xf32>
    %95 = vector.shape_cast %94 : vector<4x1xf32> to vector<1x4x1xf32>
    %cst_54 = arith.constant dense<0.000000e+00> : vector<1xf32>
    %96 = vector.multi_reduction <add>, %95, %cst_54 [1, 2] : vector<1x4x1xf32> to vector<1xf32>
    %97 = vector.shape_cast %96 : vector<1xf32> to vector<1x1x1xf32>
    %98 = vector.extract %97[0, 0, 0] : f32 from vector<1x1x1xf32>
    %cst_55 = arith.constant 0.000000e+00 : f32
    %99 = vector.broadcast %cst_55 : f32 to vector<4x1xf32>
    %c0_56 = arith.constant 0 : index
    %c0_57 = arith.constant 0 : index
    %c0_58 = arith.constant 0 : index
    %100 = vector.load %arg0[%c0_56, %c0_57, %c0_58] : memref<2x4x32xbf16, #tpu.memory_space<vmem>>, vector<1x4x32xbf16>
    %101 = vector.shape_cast %100 : vector<1x4x32xbf16> to vector<4x32xbf16>
    %c0_59 = arith.constant 0 : index
    %c0_60 = arith.constant 0 : index
    %c0_61 = arith.constant 0 : index
    %102 = vector.load %arg2[%c0_59, %c0_60, %c0_61] : memref<2x4x1xf32, #tpu.memory_space<vmem>>, vector<1x4x1xf32>
    %103 = vector.shape_cast %102 : vector<1x4x1xf32> to vector<4x1xf32>
    %c0_62 = arith.constant 0 : index
    %c0_63 = arith.constant 0 : index
    %c0_64 = arith.constant 0 : index
    %104 = vector.load %arg0[%c0_62, %c0_63, %c0_64] : memref<2x4x32xbf16, #tpu.memory_space<vmem>>, vector<1x4x32xbf16>
    %105 = vector.shape_cast %104 : vector<1x4x32xbf16> to vector<4x32xbf16>
    %cst_65 = arith.constant dense<0.000000e+00> : vector<4x4xf32>
    %106 = tpu.matmul %101, %105, %cst_65 {dimension_numbers = #tpu.dot_dimension_numbers<[1], [1], [0], [0], [0, 0, 1, 0], [], []>} : vector<4x32xbf16>, vector<4x32xbf16>, vector<4x4xf32> -> vector<4x4xf32>
    %c0_66 = arith.constant 0 : index
    %c0_67 = arith.constant 0 : index
    %c0_68 = arith.constant 0 : index
    %107 = vector.load %arg3[%c0_66, %c0_67, %c0_68] : memref<2x1x4xf32, #tpu.memory_space<vmem>>, vector<1x1x4xf32>
    %108 = vector.shape_cast %107 : vector<1x1x4xf32> to vector<1x4xf32>
    %109 = vector.broadcast %103 : vector<4x1xf32> to vector<4x4xf32>
    %110 = vector.broadcast %108 : vector<1x4xf32> to vector<4x4xf32>
    %111 = arith.addf %109, %110 : vector<4x4xf32>
    %cst_69 = arith.constant 2.000000e+00 : f32
    %112 = vector.broadcast %cst_69 : f32 to vector<4x4xf32>
    %113 = arith.mulf %112, %106 : vector<4x4xf32>
    %114 = arith.subf %111, %113 : vector<4x4xf32>
    %cst_70 = arith.constant 0.000000e+00 : f32
    %115 = vector.broadcast %cst_70 : f32 to vector<4x4xf32>
    %116 = arith.maximumf %114, %115 : vector<4x4xf32>
    %117 = math.sqrt %116 : vector<4x4xf32>
    %cst_71 = arith.constant -5.000000e-01 : f32
    %118 = vector.broadcast %cst_71 : f32 to vector<4x4xf32>
    %119 = arith.mulf %118, %117 : vector<4x4xf32>
    %120 = math.exp %119 : vector<4x4xf32>
    %cst_72 = arith.constant 0.000000e+00 : f32
    %121 = vector.broadcast %cst_72 : f32 to vector<4x4xf32>
    %122 = arith.select %2, %121, %120 : vector<4x4xi1>, vector<4x4xf32>
    %cst_73 = arith.constant dense<0.000000e+00> : vector<4xf32>
    %123 = vector.multi_reduction <add>, %122, %cst_73 [1] : vector<4x4xf32> to vector<4xf32>
    %124 = vector.shape_cast %123 : vector<4xf32> to vector<4x1xf32>
    %125 = arith.addf %99, %124 : vector<4x1xf32>
    %c1_74 = arith.constant 1 : index
    %c0_75 = arith.constant 0 : index
    %c0_76 = arith.constant 0 : index
    %126 = vector.load %arg0[%c1_74, %c0_75, %c0_76] : memref<2x4x32xbf16, #tpu.memory_space<vmem>>, vector<1x4x32xbf16>
    %127 = vector.shape_cast %126 : vector<1x4x32xbf16> to vector<4x32xbf16>
    %cst_77 = arith.constant dense<0.000000e+00> : vector<4x4xf32>
    %128 = tpu.matmul %101, %127, %cst_77 {dimension_numbers = #tpu.dot_dimension_numbers<[1], [1], [0], [0], [0, 0, 1, 0], [], []>} : vector<4x32xbf16>, vector<4x32xbf16>, vector<4x4xf32> -> vector<4x4xf32>
    %c1_78 = arith.constant 1 : index
    %c0_79 = arith.constant 0 : index
    %c0_80 = arith.constant 0 : index
    %129 = vector.load %arg3[%c1_78, %c0_79, %c0_80] : memref<2x1x4xf32, #tpu.memory_space<vmem>>, vector<1x1x4xf32>
    %130 = vector.shape_cast %129 : vector<1x1x4xf32> to vector<1x4xf32>
    %131 = vector.broadcast %103 : vector<4x1xf32> to vector<4x4xf32>
    %132 = vector.broadcast %130 : vector<1x4xf32> to vector<4x4xf32>
    %133 = arith.addf %131, %132 : vector<4x4xf32>
    %cst_81 = arith.constant 2.000000e+00 : f32
    %134 = vector.broadcast %cst_81 : f32 to vector<4x4xf32>
    %135 = arith.mulf %134, %128 : vector<4x4xf32>
    %136 = arith.subf %133, %135 : vector<4x4xf32>
    %cst_82 = arith.constant 0.000000e+00 : f32
    %137 = vector.broadcast %cst_82 : f32 to vector<4x4xf32>
    %138 = arith.maximumf %136, %137 : vector<4x4xf32>
    %139 = math.sqrt %138 : vector<4x4xf32>
    %cst_83 = arith.constant -5.000000e-01 : f32
    %140 = vector.broadcast %cst_83 : f32 to vector<4x4xf32>
    %141 = arith.mulf %140, %139 : vector<4x4xf32>
    %142 = math.exp %141 : vector<4x4xf32>
    %cst_84 = arith.constant dense<0.000000e+00> : vector<4xf32>
    %143 = vector.multi_reduction <add>, %142, %cst_84 [1] : vector<4x4xf32> to vector<4xf32>
    %144 = vector.shape_cast %143 : vector<4xf32> to vector<4x1xf32>
    %cst_85 = arith.constant 2.000000e+00 : f32
    %145 = vector.broadcast %cst_85 : f32 to vector<4x1xf32>
    %146 = arith.mulf %145, %144 : vector<4x1xf32>
    %147 = arith.addf %125, %146 : vector<4x1xf32>
    %c1_86 = arith.constant 1 : index
    %c0_87 = arith.constant 0 : index
    %c0_88 = arith.constant 0 : index
    %148 = vector.load %arg0[%c1_86, %c0_87, %c0_88] : memref<2x4x32xbf16, #tpu.memory_space<vmem>>, vector<1x4x32xbf16>
    %149 = vector.shape_cast %148 : vector<1x4x32xbf16> to vector<4x32xbf16>
    %c1_89 = arith.constant 1 : index
    %c0_90 = arith.constant 0 : index
    %c0_91 = arith.constant 0 : index
    %150 = vector.load %arg2[%c1_89, %c0_90, %c0_91] : memref<2x4x1xf32, #tpu.memory_space<vmem>>, vector<1x4x1xf32>
    %151 = vector.shape_cast %150 : vector<1x4x1xf32> to vector<4x1xf32>
    %c1_92 = arith.constant 1 : index
    %c0_93 = arith.constant 0 : index
    %c0_94 = arith.constant 0 : index
    %152 = vector.load %arg0[%c1_92, %c0_93, %c0_94] : memref<2x4x32xbf16, #tpu.memory_space<vmem>>, vector<1x4x32xbf16>
    %153 = vector.shape_cast %152 : vector<1x4x32xbf16> to vector<4x32xbf16>
    %cst_95 = arith.constant dense<0.000000e+00> : vector<4x4xf32>
    %154 = tpu.matmul %149, %153, %cst_95 {dimension_numbers = #tpu.dot_dimension_numbers<[1], [1], [0], [0], [0, 0, 1, 0], [], []>} : vector<4x32xbf16>, vector<4x32xbf16>, vector<4x4xf32> -> vector<4x4xf32>
    %c1_96 = arith.constant 1 : index
    %c0_97 = arith.constant 0 : index
    %c0_98 = arith.constant 0 : index
    %155 = vector.load %arg3[%c1_96, %c0_97, %c0_98] : memref<2x1x4xf32, #tpu.memory_space<vmem>>, vector<1x1x4xf32>
    %156 = vector.shape_cast %155 : vector<1x1x4xf32> to vector<1x4xf32>
    %157 = vector.broadcast %151 : vector<4x1xf32> to vector<4x4xf32>
    %158 = vector.broadcast %156 : vector<1x4xf32> to vector<4x4xf32>
    %159 = arith.addf %157, %158 : vector<4x4xf32>
    %cst_99 = arith.constant 2.000000e+00 : f32
    %160 = vector.broadcast %cst_99 : f32 to vector<4x4xf32>
    %161 = arith.mulf %160, %154 : vector<4x4xf32>
    %162 = arith.subf %159, %161 : vector<4x4xf32>
    %cst_100 = arith.constant 0.000000e+00 : f32
    %163 = vector.broadcast %cst_100 : f32 to vector<4x4xf32>
    %164 = arith.maximumf %162, %163 : vector<4x4xf32>
    %165 = math.sqrt %164 : vector<4x4xf32>
    %cst_101 = arith.constant -5.000000e-01 : f32
    %166 = vector.broadcast %cst_101 : f32 to vector<4x4xf32>
    %167 = arith.mulf %166, %165 : vector<4x4xf32>
    %168 = math.exp %167 : vector<4x4xf32>
    %cst_102 = arith.constant 0.000000e+00 : f32
    %169 = vector.broadcast %cst_102 : f32 to vector<4x4xf32>
    %170 = arith.select %2, %169, %168 : vector<4x4xi1>, vector<4x4xf32>
    %cst_103 = arith.constant dense<0.000000e+00> : vector<4xf32>
    %171 = vector.multi_reduction <add>, %170, %cst_103 [1] : vector<4x4xf32> to vector<4xf32>
    %172 = vector.shape_cast %171 : vector<4xf32> to vector<4x1xf32>
    %173 = arith.addf %147, %172 : vector<4x1xf32>
    %174 = vector.shape_cast %173 : vector<4x1xf32> to vector<1x4x1xf32>
    %cst_104 = arith.constant dense<0.000000e+00> : vector<1xf32>
    %175 = vector.multi_reduction <add>, %174, %cst_104 [1, 2] : vector<1x4x1xf32> to vector<1xf32>
    %176 = vector.shape_cast %175 : vector<1xf32> to vector<1x1x1xf32>
    %177 = vector.extract %176[0, 0, 0] : f32 from vector<1x1x1xf32>
    %cst_105 = arith.constant 8.000000e+00 : f32
    %178 = arith.addf %177, %cst_105 : f32
    %cst_106 = arith.constant 2.000000e+00 : f32
    %179 = arith.mulf %cst_106, %98 : f32
    %180 = arith.subf %178, %179 : f32
    %cst_107 = arith.constant 0.000000e+00 : f32
    %181 = vector.broadcast %cst_107 : f32 to vector<4x1xf32>
    %c0_108 = arith.constant 0 : index
    %c0_109 = arith.constant 0 : index
    %c0_110 = arith.constant 0 : index
    %182 = vector.load %arg1[%c0_108, %c0_109, %c0_110] : memref<2x4x32xbf16, #tpu.memory_space<vmem>>, vector<1x4x32xbf16>
    %183 = vector.shape_cast %182 : vector<1x4x32xbf16> to vector<4x32xbf16>
    %c0_111 = arith.constant 0 : index
    %c0_112 = arith.constant 0 : index
    %c0_113 = arith.constant 0 : index
    %184 = vector.load %arg4[%c0_111, %c0_112, %c0_113] : memref<2x4x1xf32, #tpu.memory_space<vmem>>, vector<1x4x1xf32>
    %185 = vector.shape_cast %184 : vector<1x4x1xf32> to vector<4x1xf32>
    %c0_114 = arith.constant 0 : index
    %c0_115 = arith.constant 0 : index
    %c0_116 = arith.constant 0 : index
    %186 = vector.load %arg1[%c0_114, %c0_115, %c0_116] : memref<2x4x32xbf16, #tpu.memory_space<vmem>>, vector<1x4x32xbf16>
    %187 = vector.shape_cast %186 : vector<1x4x32xbf16> to vector<4x32xbf16>
    %cst_117 = arith.constant dense<0.000000e+00> : vector<4x4xf32>
    %188 = tpu.matmul %183, %187, %cst_117 {dimension_numbers = #tpu.dot_dimension_numbers<[1], [1], [0], [0], [0, 0, 1, 0], [], []>} : vector<4x32xbf16>, vector<4x32xbf16>, vector<4x4xf32> -> vector<4x4xf32>
    %c0_118 = arith.constant 0 : index
    %c0_119 = arith.constant 0 : index
    %c0_120 = arith.constant 0 : index
    %189 = vector.load %arg5[%c0_118, %c0_119, %c0_120] : memref<2x1x4xf32, #tpu.memory_space<vmem>>, vector<1x1x4xf32>
    %190 = vector.shape_cast %189 : vector<1x1x4xf32> to vector<1x4xf32>
    %191 = vector.broadcast %185 : vector<4x1xf32> to vector<4x4xf32>
    %192 = vector.broadcast %190 : vector<1x4xf32> to vector<4x4xf32>
    %193 = arith.addf %191, %192 : vector<4x4xf32>
    %cst_121 = arith.constant 2.000000e+00 : f32
    %194 = vector.broadcast %cst_121 : f32 to vector<4x4xf32>
    %195 = arith.mulf %194, %188 : vector<4x4xf32>
    %196 = arith.subf %193, %195 : vector<4x4xf32>
    %cst_122 = arith.constant 0.000000e+00 : f32
    %197 = vector.broadcast %cst_122 : f32 to vector<4x4xf32>
    %198 = arith.maximumf %196, %197 : vector<4x4xf32>
    %199 = math.sqrt %198 : vector<4x4xf32>
    %cst_123 = arith.constant -5.000000e-01 : f32
    %200 = vector.broadcast %cst_123 : f32 to vector<4x4xf32>
    %201 = arith.mulf %200, %199 : vector<4x4xf32>
    %202 = math.exp %201 : vector<4x4xf32>
    %cst_124 = arith.constant 0.000000e+00 : f32
    %203 = vector.broadcast %cst_124 : f32 to vector<4x4xf32>
    %204 = arith.select %2, %203, %202 : vector<4x4xi1>, vector<4x4xf32>
    %cst_125 = arith.constant dense<0.000000e+00> : vector<4xf32>
    %205 = vector.multi_reduction <add>, %204, %cst_125 [1] : vector<4x4xf32> to vector<4xf32>
    %206 = vector.shape_cast %205 : vector<4xf32> to vector<4x1xf32>
    %207 = arith.addf %181, %206 : vector<4x1xf32>
    %c1_126 = arith.constant 1 : index
    %c0_127 = arith.constant 0 : index
    %c0_128 = arith.constant 0 : index
    %208 = vector.load %arg1[%c1_126, %c0_127, %c0_128] : memref<2x4x32xbf16, #tpu.memory_space<vmem>>, vector<1x4x32xbf16>
    %209 = vector.shape_cast %208 : vector<1x4x32xbf16> to vector<4x32xbf16>
    %cst_129 = arith.constant dense<0.000000e+00> : vector<4x4xf32>
    %210 = tpu.matmul %183, %209, %cst_129 {dimension_numbers = #tpu.dot_dimension_numbers<[1], [1], [0], [0], [0, 0, 1, 0], [], []>} : vector<4x32xbf16>, vector<4x32xbf16>, vector<4x4xf32> -> vector<4x4xf32>
    %c1_130 = arith.constant 1 : index
    %c0_131 = arith.constant 0 : index
    %c0_132 = arith.constant 0 : index
    %211 = vector.load %arg5[%c1_130, %c0_131, %c0_132] : memref<2x1x4xf32, #tpu.memory_space<vmem>>, vector<1x1x4xf32>
    %212 = vector.shape_cast %211 : vector<1x1x4xf32> to vector<1x4xf32>
    %213 = vector.broadcast %185 : vector<4x1xf32> to vector<4x4xf32>
    %214 = vector.broadcast %212 : vector<1x4xf32> to vector<4x4xf32>
    %215 = arith.addf %213, %214 : vector<4x4xf32>
    %cst_133 = arith.constant 2.000000e+00 : f32
    %216 = vector.broadcast %cst_133 : f32 to vector<4x4xf32>
    %217 = arith.mulf %216, %210 : vector<4x4xf32>
    %218 = arith.subf %215, %217 : vector<4x4xf32>
    %cst_134 = arith.constant 0.000000e+00 : f32
    %219 = vector.broadcast %cst_134 : f32 to vector<4x4xf32>
    %220 = arith.maximumf %218, %219 : vector<4x4xf32>
    %221 = math.sqrt %220 : vector<4x4xf32>
    %cst_135 = arith.constant -5.000000e-01 : f32
    %222 = vector.broadcast %cst_135 : f32 to vector<4x4xf32>
    %223 = arith.mulf %222, %221 : vector<4x4xf32>
    %224 = math.exp %223 : vector<4x4xf32>
    %cst_136 = arith.constant dense<0.000000e+00> : vector<4xf32>
    %225 = vector.multi_reduction <add>, %224, %cst_136 [1] : vector<4x4xf32> to vector<4xf32>
    %226 = vector.shape_cast %225 : vector<4xf32> to vector<4x1xf32>
    %cst_137 = arith.constant 2.000000e+00 : f32
    %227 = vector.broadcast %cst_137 : f32 to vector<4x1xf32>
    %228 = arith.mulf %227, %226 : vector<4x1xf32>
    %229 = arith.addf %207, %228 : vector<4x1xf32>
    %c1_138 = arith.constant 1 : index
    %c0_139 = arith.constant 0 : index
    %c0_140 = arith.constant 0 : index
    %230 = vector.load %arg1[%c1_138, %c0_139, %c0_140] : memref<2x4x32xbf16, #tpu.memory_space<vmem>>, vector<1x4x32xbf16>
    %231 = vector.shape_cast %230 : vector<1x4x32xbf16> to vector<4x32xbf16>
    %c1_141 = arith.constant 1 : index
    %c0_142 = arith.constant 0 : index
    %c0_143 = arith.constant 0 : index
    %232 = vector.load %arg4[%c1_141, %c0_142, %c0_143] : memref<2x4x1xf32, #tpu.memory_space<vmem>>, vector<1x4x1xf32>
    %233 = vector.shape_cast %232 : vector<1x4x1xf32> to vector<4x1xf32>
    %c1_144 = arith.constant 1 : index
    %c0_145 = arith.constant 0 : index
    %c0_146 = arith.constant 0 : index
    %234 = vector.load %arg1[%c1_144, %c0_145, %c0_146] : memref<2x4x32xbf16, #tpu.memory_space<vmem>>, vector<1x4x32xbf16>
    %235 = vector.shape_cast %234 : vector<1x4x32xbf16> to vector<4x32xbf16>
    %cst_147 = arith.constant dense<0.000000e+00> : vector<4x4xf32>
    %236 = tpu.matmul %231, %235, %cst_147 {dimension_numbers = #tpu.dot_dimension_numbers<[1], [1], [0], [0], [0, 0, 1, 0], [], []>} : vector<4x32xbf16>, vector<4x32xbf16>, vector<4x4xf32> -> vector<4x4xf32>
    %c1_148 = arith.constant 1 : index
    %c0_149 = arith.constant 0 : index
    %c0_150 = arith.constant 0 : index
    %237 = vector.load %arg5[%c1_148, %c0_149, %c0_150] : memref<2x1x4xf32, #tpu.memory_space<vmem>>, vector<1x1x4xf32>
    %238 = vector.shape_cast %237 : vector<1x1x4xf32> to vector<1x4xf32>
    %239 = vector.broadcast %233 : vector<4x1xf32> to vector<4x4xf32>
    %240 = vector.broadcast %238 : vector<1x4xf32> to vector<4x4xf32>
    %241 = arith.addf %239, %240 : vector<4x4xf32>
    %cst_151 = arith.constant 2.000000e+00 : f32
    %242 = vector.broadcast %cst_151 : f32 to vector<4x4xf32>
    %243 = arith.mulf %242, %236 : vector<4x4xf32>
    %244 = arith.subf %241, %243 : vector<4x4xf32>
    %cst_152 = arith.constant 0.000000e+00 : f32
    %245 = vector.broadcast %cst_152 : f32 to vector<4x4xf32>
    %246 = arith.maximumf %244, %245 : vector<4x4xf32>
    %247 = math.sqrt %246 : vector<4x4xf32>
    %cst_153 = arith.constant -5.000000e-01 : f32
    %248 = vector.broadcast %cst_153 : f32 to vector<4x4xf32>
    %249 = arith.mulf %248, %247 : vector<4x4xf32>
    %250 = math.exp %249 : vector<4x4xf32>
    %cst_154 = arith.constant 0.000000e+00 : f32
    %251 = vector.broadcast %cst_154 : f32 to vector<4x4xf32>
    %252 = arith.select %2, %251, %250 : vector<4x4xi1>, vector<4x4xf32>
    %cst_155 = arith.constant dense<0.000000e+00> : vector<4xf32>
    %253 = vector.multi_reduction <add>, %252, %cst_155 [1] : vector<4x4xf32> to vector<4xf32>
    %254 = vector.shape_cast %253 : vector<4xf32> to vector<4x1xf32>
    %255 = arith.addf %229, %254 : vector<4x1xf32>
    %256 = vector.shape_cast %255 : vector<4x1xf32> to vector<1x4x1xf32>
    %cst_156 = arith.constant dense<0.000000e+00> : vector<1xf32>
    %257 = vector.multi_reduction <add>, %256, %cst_156 [1, 2] : vector<1x4x1xf32> to vector<1xf32>
    %258 = vector.shape_cast %257 : vector<1xf32> to vector<1x1x1xf32>
    %259 = vector.extract %258[0, 0, 0] : f32 from vector<1x1x1xf32>
    %cst_157 = arith.constant 8.000000e+00 : f32
    %260 = arith.addf %259, %cst_157 : f32
    %261 = arith.addf %180, %260 : f32
    %cst_158 = arith.constant 6.400000e+01 : f32
    %262 = arith.divf %261, %cst_158 : f32
    %cst_159 = arith.constant 0.000000e+00 : f32
    %263 = vector.broadcast %cst_159 : f32 to vector<4x4xf32>
    %264 = arith.select %2, %77, %263 : vector<4x4xi1>, vector<4x4xf32>
    %cst_160 = arith.constant dense<0.000000e+00> : vector<4xf32>
    %265 = vector.multi_reduction <add>, %264, %cst_160 [1] : vector<4x4xf32> to vector<4xf32>
    %266 = vector.shape_cast %265 : vector<4xf32> to vector<4x1xf32>
    %cst_161 = arith.constant dense<0.000000e+00> : vector<4xf32>
    %267 = vector.multi_reduction <add>, %264, %cst_161 [0] : vector<4x4xf32> to vector<4xf32>
    %268 = vector.shape_cast %267 : vector<4xf32> to vector<1x4xf32>
    %cst_162 = arith.constant 1.000000e-01 : f32
    %269 = vector.broadcast %cst_162 : f32 to vector<4x4xf32>
    %270 = arith.addf %269, %77 : vector<4x4xf32>
    %271 = vector.broadcast %266 : vector<4x1xf32> to vector<4x4xf32>
    %272 = arith.subf %270, %271 : vector<4x4xf32>
    %cst_163 = arith.constant 0.000000e+00 : f32
    %273 = vector.broadcast %cst_163 : f32 to vector<4x4xf32>
    %274 = arith.maximumf %272, %273 : vector<4x4xf32>
    %cst_164 = arith.constant 0.000000e+00 : f32
    %275 = vector.broadcast %cst_164 : f32 to vector<4x4xf32>
    %276 = arith.select %2, %275, %274 : vector<4x4xi1>, vector<4x4xf32>
    %cst_165 = arith.constant 1.000000e-01 : f32
    %277 = vector.broadcast %cst_165 : f32 to vector<4x4xf32>
    %278 = arith.addf %277, %77 : vector<4x4xf32>
    %279 = vector.broadcast %268 : vector<1x4xf32> to vector<4x4xf32>
    %280 = arith.subf %278, %279 : vector<4x4xf32>
    %cst_166 = arith.constant 0.000000e+00 : f32
    %281 = vector.broadcast %cst_166 : f32 to vector<4x4xf32>
    %282 = arith.maximumf %280, %281 : vector<4x4xf32>
    %cst_167 = arith.constant 0.000000e+00 : f32
    %283 = vector.broadcast %cst_167 : f32 to vector<4x4xf32>
    %284 = arith.select %2, %283, %282 : vector<4x4xi1>, vector<4x4xf32>
    %285 = vector.shape_cast %276 : vector<4x4xf32> to vector<1x4x4xf32>
    %cst_168 = arith.constant dense<0.000000e+00> : vector<1xf32>
    %286 = vector.multi_reduction <add>, %285, %cst_168 [1, 2] : vector<1x4x4xf32> to vector<1xf32>
    %287 = vector.shape_cast %286 : vector<1xf32> to vector<1x1x1xf32>
    %288 = vector.extract %287[0, 0, 0] : f32 from vector<1x1x1xf32>
    %cst_169 = arith.constant 1.600000e+01 : f32
    %289 = arith.divf %288, %cst_169 : f32
    %290 = vector.shape_cast %284 : vector<4x4xf32> to vector<1x4x4xf32>
    %cst_170 = arith.constant dense<0.000000e+00> : vector<1xf32>
    %291 = vector.multi_reduction <add>, %290, %cst_170 [1, 2] : vector<1x4x4xf32> to vector<1xf32>
    %292 = vector.shape_cast %291 : vector<1xf32> to vector<1x1x1xf32>
    %293 = vector.extract %292[0, 0, 0] : f32 from vector<1x1x1xf32>
    %cst_171 = arith.constant 1.600000e+01 : f32
    %294 = arith.divf %293, %cst_171 : f32
    %295 = arith.addf %289, %294 : f32
    %c0_172 = arith.constant 0 : index
    %c0_173 = arith.constant 0 : index
    %c0_174 = arith.constant 0 : index
    %296 = vector.load %arg6[%c0_172, %c0_173, %c0_174] : memref<2x4x32xf32, #tpu.memory_space<vmem>>, vector<1x4x32xf32>
    %297 = vector.shape_cast %296 : vector<1x4x32xf32> to vector<4x32xf32>
    %c1_175 = arith.constant 1 : index
    %c0_176 = arith.constant 0 : index
    %c0_177 = arith.constant 0 : index
    %298 = vector.load %arg6[%c1_175, %c0_176, %c0_177] : memref<2x4x32xf32, #tpu.memory_space<vmem>>, vector<1x4x32xf32>
    %299 = vector.shape_cast %298 : vector<1x4x32xf32> to vector<4x32xf32>
    %300 = arith.mulf %297, %297 : vector<4x32xf32>
    %cst_178 = arith.constant dense<0.000000e+00> : vector<4xf32>
    %301 = vector.multi_reduction <add>, %300, %cst_178 [1] : vector<4x32xf32> to vector<4xf32>
    %302 = vector.shape_cast %301 : vector<4xf32> to vector<4x1xf32>
    %cst_179 = arith.constant 1.000000e-24 : f32
    %303 = vector.broadcast %cst_179 : f32 to vector<4x1xf32>
    %304 = arith.maximumf %302, %303 : vector<4x1xf32>
    %305 = math.rsqrt %304 : vector<4x1xf32>
    %306 = arith.mulf %299, %299 : vector<4x32xf32>
    %cst_180 = arith.constant dense<0.000000e+00> : vector<4xf32>
    %307 = vector.multi_reduction <add>, %306, %cst_180 [1] : vector<4x32xf32> to vector<4xf32>
    %308 = vector.shape_cast %307 : vector<4xf32> to vector<4x1xf32>
    %cst_181 = arith.constant 1.000000e-24 : f32
    %309 = vector.broadcast %cst_181 : f32 to vector<4x1xf32>
    %310 = arith.maximumf %308, %309 : vector<4x1xf32>
    %311 = math.rsqrt %310 : vector<4x1xf32>
    %cst_182 = arith.constant 0.000000e+00 : f32
    %312 = vector.broadcast %cst_182 : f32 to vector<4x1xf32>
    %313 = arith.mulf %297, %299 : vector<4x32xf32>
    %cst_183 = arith.constant dense<0.000000e+00> : vector<4xf32>
    %314 = vector.multi_reduction <add>, %313, %cst_183 [1] : vector<4x32xf32> to vector<4xf32>
    %315 = vector.shape_cast %314 : vector<4xf32> to vector<4x1xf32>
    %316 = arith.mulf %315, %305 : vector<4x1xf32>
    %317 = arith.mulf %316, %311 : vector<4x1xf32>
    %318 = arith.mulf %317, %317 : vector<4x1xf32>
    %cst_184 = arith.constant 2.000000e+00 : f32
    %319 = vector.broadcast %cst_184 : f32 to vector<4x1xf32>
    %320 = arith.mulf %319, %318 : vector<4x1xf32>
    %321 = arith.addf %312, %320 : vector<4x1xf32>
    %322 = math.sqrt %321 : vector<4x1xf32>
    %cst_185 = arith.constant 4.000000e+00 : f32
    %323 = vector.broadcast %cst_185 : f32 to vector<4x1xf32>
    %324 = arith.divf %322, %323 : vector<4x1xf32>
    %325 = vector.shape_cast %324 : vector<4x1xf32> to vector<1x4x1xf32>
    %cst_186 = arith.constant dense<0.000000e+00> : vector<1xf32>
    %326 = vector.multi_reduction <add>, %325, %cst_186 [1, 2] : vector<1x4x1xf32> to vector<1xf32>
    %327 = vector.shape_cast %326 : vector<1xf32> to vector<1x1x1xf32>
    %328 = vector.extract %327[0, 0, 0] : f32 from vector<1x1x1xf32>
    %cst_187 = arith.constant 4.000000e+00 : f32
    %329 = arith.divf %328, %cst_187 : f32
    %c0_188 = arith.constant 0 : index
    %c0_189 = arith.constant 0 : index
    %c0_190 = arith.constant 0 : index
    %330 = vector.load %arg7[%c0_188, %c0_189, %c0_190] : memref<2x4x32xf32, #tpu.memory_space<vmem>>, vector<1x4x32xf32>
    %331 = vector.shape_cast %330 : vector<1x4x32xf32> to vector<4x32xf32>
    %c1_191 = arith.constant 1 : index
    %c0_192 = arith.constant 0 : index
    %c0_193 = arith.constant 0 : index
    %332 = vector.load %arg7[%c1_191, %c0_192, %c0_193] : memref<2x4x32xf32, #tpu.memory_space<vmem>>, vector<1x4x32xf32>
    %333 = vector.shape_cast %332 : vector<1x4x32xf32> to vector<4x32xf32>
    %334 = arith.mulf %331, %331 : vector<4x32xf32>
    %cst_194 = arith.constant dense<0.000000e+00> : vector<4xf32>
    %335 = vector.multi_reduction <add>, %334, %cst_194 [1] : vector<4x32xf32> to vector<4xf32>
    %336 = vector.shape_cast %335 : vector<4xf32> to vector<4x1xf32>
    %cst_195 = arith.constant 1.000000e-24 : f32
    %337 = vector.broadcast %cst_195 : f32 to vector<4x1xf32>
    %338 = arith.maximumf %336, %337 : vector<4x1xf32>
    %339 = math.rsqrt %338 : vector<4x1xf32>
    %340 = arith.mulf %333, %333 : vector<4x32xf32>
    %cst_196 = arith.constant dense<0.000000e+00> : vector<4xf32>
    %341 = vector.multi_reduction <add>, %340, %cst_196 [1] : vector<4x32xf32> to vector<4xf32>
    %342 = vector.shape_cast %341 : vector<4xf32> to vector<4x1xf32>
    %cst_197 = arith.constant 1.000000e-24 : f32
    %343 = vector.broadcast %cst_197 : f32 to vector<4x1xf32>
    %344 = arith.maximumf %342, %343 : vector<4x1xf32>
    %345 = math.rsqrt %344 : vector<4x1xf32>
    %cst_198 = arith.constant 0.000000e+00 : f32
    %346 = vector.broadcast %cst_198 : f32 to vector<4x1xf32>
    %347 = arith.mulf %331, %333 : vector<4x32xf32>
    %cst_199 = arith.constant dense<0.000000e+00> : vector<4xf32>
    %348 = vector.multi_reduction <add>, %347, %cst_199 [1] : vector<4x32xf32> to vector<4xf32>
    %349 = vector.shape_cast %348 : vector<4xf32> to vector<4x1xf32>
    %350 = arith.mulf %349, %339 : vector<4x1xf32>
    %351 = arith.mulf %350, %345 : vector<4x1xf32>
    %352 = arith.mulf %351, %351 : vector<4x1xf32>
    %cst_200 = arith.constant 2.000000e+00 : f32
    %353 = vector.broadcast %cst_200 : f32 to vector<4x1xf32>
    %354 = arith.mulf %353, %352 : vector<4x1xf32>
    %355 = arith.addf %346, %354 : vector<4x1xf32>
    %356 = math.sqrt %355 : vector<4x1xf32>
    %cst_201 = arith.constant 4.000000e+00 : f32
    %357 = vector.broadcast %cst_201 : f32 to vector<4x1xf32>
    %358 = arith.divf %356, %357 : vector<4x1xf32>
    %359 = vector.shape_cast %358 : vector<4x1xf32> to vector<1x4x1xf32>
    %cst_202 = arith.constant dense<0.000000e+00> : vector<1xf32>
    %360 = vector.multi_reduction <add>, %359, %cst_202 [1, 2] : vector<1x4x1xf32> to vector<1xf32>
    %361 = vector.shape_cast %360 : vector<1xf32> to vector<1x1x1xf32>
    %362 = vector.extract %361[0, 0, 0] : f32 from vector<1x1x1xf32>
    %cst_203 = arith.constant 4.000000e+00 : f32
    %363 = arith.divf %362, %cst_203 : f32
    %364 = arith.addf %329, %363 : f32
    %c0_204 = arith.constant 0 : index
    %365 = memref.load %arg8[%c0_204] : memref<3xf32, #tpu.memory_space<smem>>
    memref.store %295, %arg8[%c0_204] : memref<3xf32, #tpu.memory_space<smem>>
    %c1_205 = arith.constant 1 : index
    %366 = memref.load %arg8[%c1_205] : memref<3xf32, #tpu.memory_space<smem>>
    memref.store %364, %arg8[%c1_205] : memref<3xf32, #tpu.memory_space<smem>>
    %c2 = arith.constant 2 : index
    %367 = memref.load %arg8[%c2] : memref<3xf32, #tpu.memory_space<smem>>
    memref.store %262, %arg8[%c2] : memref<3xf32, #tpu.memory_space<smem>>
    return
  }
}

</mosaic_0001>

<bundles_post_ra>
// kernel: tpu_custom_call.1
= control target key start
LH: loop header
LB: loop body
LE: loop exit
PB: predicated region body
PF: predicated region fallthrough
CT: control target
= control target key end

     0   :  { %13 = vsyncpa [#allocation3], 0  ;;  %s1282_s0 = inlined_call_operand.vmem [shape: bf16[2,4,32], index: 0, kind: input, shape index: {}]   ;;  %s1283_s1 = inlined_call_operand.hbm [shape: bf16[2,4,32], index: 1, kind: input, shape index: {}]   ;;  %s1284_s2 = inlined_call_operand.vmem [shape: f32[2,4,1], index: 2, kind: input, shape index: {}]   ;;  %s1285_s3 = inlined_call_operand.hbm [shape: f32[2,1,4], index: 3, kind: input, shape index: {}]   ;;  %s1286_s4 = inlined_call_operand.vmem [shape: f32[2,4,1], index: 4, kind: input, shape index: {}]   ;;  %s1287_s5 = inlined_call_operand.vmem [shape: f32[2,1,4], index: 5, kind: input, shape index: {}]   ;;  %s1288_s6 = inlined_call_operand.vmem [shape: f32[2,4,32], index: 6, kind: input, shape index: {}]   ;;  %s1289_s7 = inlined_call_operand.vmem [shape: f32[2,4,32], index: 7, kind: input, shape index: {}]   ;;  %s1290_s8 = inlined_call_operand.hbm [shape: f32[3], index: 8, kind: output, shape index: {}]  }
   0x1   :  { %14 = vsyncpa [#allocation6], 0 }
   0x2   :  { %15 = vsyncpa [#allocation4], 0  ;;  %s22_s29 = sshll.u32 %s1283_s1, 4  ;;  %s959_s30 = smov [#allocation2]   ;;  %s23_s29 = int_to_ptr.hbm [resolvable:$true] %s22_s29 }
   0x3   :  { %s24_s9 = sshll.u32 %s959_s30, 4  ;;  %s37_s12 = sshll.u32 %s1285_s3, 4  ;;  %s25_s9 = int_to_ptr.vmem [resolvable:$true] %s24_s9  ;;  %s38_s12 = int_to_ptr.hbm [resolvable:$true] %s37_s12 }
   0x4   :  { %s960_s13 = smov 32   ;;  %s961_s14 = smov 2  }
   0x5   :  { %30 = dma.hbm_to_vmem [thread:$0]  %s23_s29, 64, %s25_s9, [#allocation3], %s960_s13, %s960_s13, %s961_s14  }
   0x6   :  { %s962_s15 = smov [#allocation5]   ;;  %s963_s17 = smov 16  }
   0x7   :  { %s39_s16 = sshll.u32 %s962_s15, 4  ;;  %s964_s18 = smov 1   ;;  %s40_s16 = int_to_ptr.vmem [resolvable:$true] %s39_s16 }
   0x8   :  { %45 = dma.hbm_to_vmem [thread:$0]  %s38_s12, 32, %s40_s16, [#allocation6], %s963_s17, %s963_s17, %s964_s18  }
   0x9   :  { %953 = dma.done.wait [#allocation3], 64  }
   0xa   :  { %954 = vsyncadd [#allocation3], 4294967232 }
   0xb   :  { %955 = dma.done.wait [#allocation6], 32  }
   0xc   :  { %956 = vsyncadd [#allocation6], 4294967264  ;;  %v965_v0 = vmov 0   ;;  %vm71_vm0 = vcmask 261120   ;;  %v70_v1 = vld [vmem:[#allocation2] sm:$0x3]  ;;  %v63_v56 = vlaneseq }
   0xd   :  { %829 = vset.pattern.permute.xlu0 %v965_v0  ;;  %830 = vset.pattern.permute.xlu1 %v965_v0  ;;  %v125_v2 = vld [vmem:[#allocation2 + $0x2] sm:$0x3]  ;;  %v68_v3 = vld [vmem:[%s1282_s0] sm:$0x3]  ;;  %v76_v4 = vsel %vm71_vm0, %v70_v1, 0  ;;  %vm606_vm1 = vcmask 257024  }
   0xe   :  { %v127_v5 = vsel %vm71_vm0, %v125_v2, 0  ;;  %v785_v6 = vld [vmem:[%s1282_s0 + $0x2] sm:$0x3]  ;;  %85 = vmatpush.bf16.xpose.msra.mxu0 %v76_v4  ;;  %v73_v8 = vsel %vm71_vm0, %v68_v3, 0  ;;  %185 = vmatpush.bf16.xpose.msra.mxu2 %v76_v4  ;;  %v786_v10 = vld [vmem:[%s1284_s2 + $0x4] sm:$0xf] }
   0xf   :  { %v69_v7 = vld [vmem:[%s1284_s2] sm:$0xf]  ;;  %136 = vmatpush.bf16.xpose.msra.mxu1 %v127_v5  ;;  %v176_v9 = vsel %vm71_vm0, %v785_v6, 0  ;;  %227 = vmatpush.bf16.xpose.msra.mxu3 %v127_v5  ;;  %v794_v15 = vld [vmem:[%s1286_s4 + $0x4] sm:$0xf]  ;;  %v64_v0 = vshrl.u32 %v63_v56, 7 }
  0x10   :  { %94 = vperm.xlu0 %829, %v69_v7   ;;  %v401_v11 = vld [vmem:[%s1286_s4] sm:$0xf]  ;;  %v796_v19 = vld [vmem:[%s1288_s6 + $0x4] sm:$0xf]  ;;  %vm119_vm2 = vcmask 27648   ;;  %s770_s23 = sshll.u32 %s1290_s8, 4  ;;  %s771_s23 = int_to_ptr.hbm [resolvable:$true] %s770_s23 }
  0x11   :  { %v602_v12 = vld [vmem:[%s1288_s6] sm:$0xf]  ;;  %417 = vperm.xlu1 %830, %v401_v11   ;;  %v621_v20 = vmul.f32 %v796_v19, %v796_v19  ;;  %v797_v22 = vld [vmem:[%s1289_s7 + $0x4] sm:$0xf]  ;;  %s969_s11 = smov [#allocation7]  }
  0x12   :  { %v605_v13 = vmul.f32 %v602_v12, %v602_v12  ;;  %v684_v16 = vld [vmem:[%s1289_s7] sm:$0xf]  ;;  %v702_v23 = vmul.f32 %v797_v22, %v797_v22  ;;  %v636_v25 = vmul.f32 %v796_v19, %v602_v12  ;;  %v834_v59 = vld [vmem:[#allocation5] ss:$0 sm:$0xff]  ;;  %v833_v61 = vld [vmem:[#allocation5 + $0x1] ss:$0 sm:$0xff] }
  0x13   :  { %v687_v17 = vmul.f32 %v684_v16, %v684_v16  ;;  %v622_v21 = vsel %vm606_vm1, %v621_v20, 0.0  ;;  %v717_v27 = vmul.f32 %v797_v22, %v684_v16  ;;  %v831_v30 = vld [vmem:[%s1287_s5] ss:$0 sm:$0xff]  ;;  %v1077_v31 = vld [vmem:[%s1287_s5 + $0x1] ss:$0 sm:$0xff] }
  0x14   :  { %v607_v14 = vsel %vm606_vm1, %v605_v13, 0.0  ;;  %v703_v24 = vsel %vm606_vm1, %v702_v23, 0.0  ;;  %v637_v26 = vsel %vm606_vm1, %v636_v25, 0.0 }
  0x15   :  { %782 = vmatmul.msk.bf16.vlgmr.msra.gmra.mxu0 %vm71_vm0, %v68_v3  ;;  %787 = vmatmul.msk.bf16.vlgmr.msra.gmra.mxu2 %vm71_vm0, %v785_v6  ;;  %v688_v18 = vsel %vm606_vm1, %v687_v17, 0.0  ;;  %v718_v28 = vsel %vm606_vm1, %v717_v27, 0.0 }
  0x16   :  { %275 = vmatpush.bf16.xpose.msrb.mxu0 %v73_v8  ;;  %358 = vmatpush.bf16.xpose.msrb.mxu2 %v176_v9 }
  0x17   :  { %316 = vmatpush.bf16.xpose.msrb.mxu1 %v176_v9  ;;  %409 = vmatpush.bf16.xpose.msrb.mxu3 %v76_v4 }
  0x18   :  { %783 = vmatmul.msk.bf16.vlgmr.msra.gmra.mxu1 %vm71_vm0, %v68_v3  ;;  %788 = vmatmul.msk.bf16.vlgmr.msra.gmra.mxu3 %vm71_vm0, %v785_v6 }
  0x19   :  { %194 = vperm.xlu0 %829, %v786_v10   ;;  %608 = vadd.xlane.f32.xlu2 %v607_v14 }
  0x1a   :  { %498 = vperm.xlu1 %830, %v794_v15  }
  0x1e   :  { %451 = vmatpush.bf16.xpose.msra.mxu0 %v127_v5 }
  0x1f   :  { %490 = vmatpush.bf16.xpose.msra.mxu1 %v127_v5 }
  0x21   :  { %689 = vadd.xlane.f32.xlu2 %v688_v18 }
  0x25   :  { %789 = vmatmul.msk.bf16.vlgmr.msrb.gmra.mxu0 %vm71_vm0, %v68_v3  ;;  %791 = vmatmul.msk.bf16.vlgmr.msrb.gmra.mxu2 %vm71_vm0, %v785_v6 }
  0x28   :  { %790 = vmatmul.msk.bf16.vlgmr.msrb.gmra.mxu1 %vm71_vm0, %v68_v3  ;;  %792 = vmatmul.msk.bf16.vlgmr.msrb.gmra.mxu3 %vm71_vm0, %v70_v1 }
  0x29   :  { %638 = vadd.xlane.f32.xlu2 %v637_v26 }
  0x31   :  { %719 = vadd.xlane.f32.xlu2 %v718_v28 }
  0x35   :  { %793 = vmatmul.msk.bf16.vlgmr.msra.gmra.mxu0 %vm71_vm0, %v70_v1  ;;  %v66_v1 = vand.u32 127, %v63_v56 }
  0x37   :  { %vm1097_vm3 = vcmp.eq.s32.totalorder %v64_v0, %v66_v1 }
  0x38   :  { %795 = vmatmul.msk.bf16.vlgmr.msra.gmra.mxu1 %vm71_vm0, %v125_v2 }
  0x43   :  { %623 = vadd.xlane.f32.xlu0 %v622_v21 }
  0x44   :  { %704 = vadd.xlane.f32.xlu1 %v703_v24 }
  0x82   :  { %v95_v29 = vpop.permute.xlu0 %94 }
  0x83   :  { %v100_v32 = vadd.f32 %v831_v30, %v95_v29  ;;  %v148_v33 = vadd.f32 %v1077_v31, %v95_v29  ;;  %v285_v6 = vadd.f32 %v834_v59, %v95_v29  ;;  %v327_v10 = vadd.f32 %v833_v61, %v95_v29  ;;  %v418_v12 = vpop.permute.xlu1 %417 }
  0x84   :  { %v420_v21 = vadd.f32 %v831_v30, %v418_v12  ;;  %v1102_v22 = vadd.f32 %v1077_v31, %v418_v12 }
  0x8b   :  { %v195_v41 = vpop.permute.xlu0 %194 }
  0x8c   :  { %v197_v44 = vadd.f32 %v831_v30, %v195_v41  ;;  %v234_v45 = vadd.f32 %v1077_v31, %v195_v41  ;;  %v364_v16 = vadd.f32 %v833_v61, %v195_v41 }
  0x92   :  { %v87_v34 = vpop.f32.mrf.mxu0 }
  0x93   :  { %v101_v36 = vmul.f32 2.0, %v87_v34 }
  0x95   :  { %v138_v35 = vpop.f32.mrf.mxu1  ;;  %v102_v39 = vsub.f32 %v100_v32, %v101_v36 }
  0x96   :  { %v142_v37 = vmax.f32 %v87_v34, %v138_v35  ;;  %v149_v38 = vmul.f32 2.0, %v138_v35 }
  0x97   :  { %v1080_v42 = vmax.f32 %v102_v39, 0.0 }
  0x98   :  { %v150_v40 = vsub.f32 %v148_v33, %v149_v38  ;;  %v187_v46 = vpop.f32.mrf.mxu2 }
  0x99   :  { %835 = vrsqrt.f32 %v1080_v42  ;;  %v191_v48 = vmax.f32 %v142_v37, %v187_v46  ;;  %v198_v49 = vmul.f32 2.0, %v187_v46  ;;  %vm111_vm4 = vcmp.eq.f32.partialorder %v1080_v42, inf }
  0x9a   :  { %v1082_v43 = vmax.f32 %v150_v40, 0.0  ;;  %v89_v51 = vpop.f32.mrf.mxu0  ;;  %vm113_vm5 = vcmp.eq.f32.partialorder %v1080_v42, 0.0  ;;  %v114_v30 = vand.u32 2147483648, %v1080_v42 }
  0x9b   :  { %v229_v47 = vpop.f32.mrf.mxu3  ;;  %v199_v53 = vsub.f32 %v197_v44, %v198_v49 }
  0x9c   :  { %837 = vrsqrt.f32 %v1082_v43  ;;  %v235_v50 = vmul.f32 2.0, %v229_v47  ;;  %v1087_v54 = vmax.f32 %v191_v48, %v229_v47  ;;  %vm159_vm6 = vcmp.eq.f32.partialorder %v1082_v43, inf }
  0x9d   :  { %v140_v52 = vpop.f32.mrf.mxu1  ;;  %v1089_v57 = vmax.f32 %v199_v53, 0.0  ;;  %v162_v44 = vand.u32 2147483648, %v1082_v43  ;;  %vm161_vm7 = vcmp.eq.f32.partialorder %v1082_v43, 0.0 }
  0x9e   :  { %v236_v55 = vsub.f32 %v234_v45, %v235_v50  ;;  %v546_v47 = vsel %vm1097_vm3, %v1087_v54, 0.0  ;;  %v499_v50 = vpop.permute.xlu1 %498 }
  0x9f   :  { %v836_v60 = vpop.eup %835  ;;  %839 = vrsqrt.f32 %v1089_v57  ;;  %v501_v0 = vadd.f32 %v1077_v31, %v499_v50  ;;  %vm208_vm8 = vcmp.eq.f32.partialorder %v1089_v57, inf  ;;  %vm210_vm9 = vcmp.eq.f32.partialorder %v1089_v57, 0.0 }
  0xa0   :  { %v1091_v58 = vmax.f32 %v236_v55, 0.0  ;;  %v105_v63 = vmul.f32 %v836_v60, %v1080_v42  ;;  %v189_v2 = vpop.f32.mrf.mxu2 }
  0xa2   :  { %v838_v62 = vpop.eup %837  ;;  %841 = vrsqrt.f32 %v1091_v58  ;;  %v277_v5 = vpop.f32.mrf.mxu0  ;;  %v106_v8 = vmul.f32 %v836_v60, %v105_v63  ;;  %vm245_vm10 = vcmp.eq.f32.partialorder %v1091_v58, inf  ;;  %vm247_vm11 = vcmp.eq.f32.partialorder %v1091_v58, 0.0 }
  0xa3   :  { %v231_v3 = vpop.f32.mrf.mxu3  ;;  %v153_v4 = vmul.f32 %v838_v62, %v1082_v43  ;;  %v286_v9 = vmul.f32 2.0, %v277_v5 }
  0xa4   :  { %v107_v14 = vmul.f32 0.5, %v106_v8 }
  0xa5   :  { %v318_v7 = vpop.f32.mrf.mxu1  ;;  %v154_v13 = vmul.f32 %v838_v62, %v153_v4  ;;  %v287_v17 = vsub.f32 %v285_v6, %v286_v9  ;;  %v840_v20 = vpop.eup %839 }
  0xa6   :  { %v328_v11 = vmul.f32 2.0, %v318_v7  ;;  %v108_v23 = vsub.f32 1.5, %v107_v14  ;;  %v202_v28 = vmul.f32 %v840_v20, %v1089_v57 }
  0xa7   :  { %v155_v19 = vmul.f32 0.5, %v154_v13  ;;  %v1107_v25 = vmax.f32 %v287_v17, 0.0 }
  0xa8   :  { %v329_v18 = vsub.f32 %v327_v10, %v328_v11  ;;  %v1105_v24 = vpop.eup %841  ;;  %v109_v29 = vmul.f32 %v836_v60, %v108_v23  ;;  %v360_v33 = vpop.f32.mrf.mxu2  ;;  %v203_v36 = vmul.f32 %v840_v20, %v202_v28  ;;  %v211_v11 = vand.u32 2147483648, %v1089_v57 }
  0xa9   :  { %v156_v27 = vsub.f32 1.5, %v155_v19  ;;  %v239_v32 = vmul.f32 %v1105_v24, %v1091_v58  ;;  %843 = vrsqrt.f32 %v1107_v25  ;;  %v365_v37 = vmul.f32 2.0, %v360_v33 }
  0xaa   :  { %v1109_v26 = vmax.f32 %v329_v18, 0.0  ;;  %v279_v39 = vpop.f32.mrf.mxu0  ;;  %v110_v41 = vmul.f32 %v109_v29, %v1080_v42  ;;  %v204_v46 = vmul.f32 0.5, %v203_v36  ;;  %vm296_vm12 = vcmp.eq.f32.partialorder %v1107_v25, inf }
  0xab   :  { %v411_v34 = vpop.f32.mrf.mxu3  ;;  %v157_v35 = vmul.f32 %v838_v62, %v156_v27  ;;  %v366_v48 = vsub.f32 %v364_v16, %v365_v37  ;;  %v240_v52 = vmul.f32 %v1105_v24, %v239_v32  ;;  %vm298_vm13 = vcmp.eq.f32.partialorder %v1107_v25, 0.0 }
  0xac   :  { %v421_v38 = vmul.f32 2.0, %v411_v34  ;;  %845 = vrsqrt.f32 %v1109_v26  ;;  %v112_v51 = vsel %vm111_vm4, %v1080_v42, %v110_v41  ;;  %v205_v56 = vsub.f32 1.5, %v204_v46 }
  0xad   :  { %v320_v40 = vpop.f32.mrf.mxu1  ;;  %v158_v45 = vmul.f32 %v157_v35, %v1082_v43  ;;  %v115_v53 = vsel %vm113_vm5, %v114_v30, %v112_v51  ;;  %v1135_v59 = vmax.f32 %v366_v48, 0.0  ;;  %v241_v2 = vmul.f32 0.5, %v240_v52 }
  0xae   :  { %v422_v49 = vsub.f32 %v420_v21, %v421_v38  ;;  %v116_v61 = vmul.f32 -0.5, %v115_v53  ;;  %v206_v1 = vmul.f32 %v840_v20, %v205_v56  ;;  %v1141_v42 = vsel %vm119_vm2, %v546_v47, 0.0 }
  0xaf   :  { %v160_v55 = vsel %vm159_vm6, %v1082_v43, %v158_v45  ;;  %v844_v63 = vpop.eup %843  ;;  %847 = vrsqrt.f32 %v1135_v59  ;;  %v242_v31 = vsub.f32 1.5, %v241_v2  ;;  %v550_v17 = vrot.slane %v1141_v42, 4 }
  0xb0   :  { %v1137_v60 = vmax.f32 %v422_v49, 0.0  ;;  %v163_v62 = vsel %vm161_vm7, %v162_v44, %v160_v55  ;;  %v117_v3 = vmul.f32 1.442695, %v116_v61  ;;  %v290_v43 = vmul.f32 %v844_v63, %v1107_v25  ;;  %v362_v6 = vpop.f32.mrf.mxu2 }
  0xb1   :  { %v164_v4 = vmul.f32 -0.5, %v163_v62  ;;  %v207_v8 = vmul.f32 %v206_v1, %v1089_v57  ;;  %v243_v20 = vmul.f32 %v1105_v24, %v242_v31  ;;  %v248_v48 = vand.u32 2147483648, %v1091_v58 }
  0xb2   :  { %v846_v5 = vpop.eup %845  ;;  %849 = vrsqrt.f32 %v1137_v60  ;;  %v453_v9 = vpop.f32.mrf.mxu0  ;;  %v291_v12 = vmul.f32 %v844_v63, %v290_v43  ;;  %v299_v49 = vand.u32 2147483648, %v1107_v25  ;;  %vm375_vm14 = vcmp.eq.f32.partialorder %v1135_v59, inf }
  0xb3   :  { %v413_v7 = vpop.f32.mrf.mxu3  ;;  %851 = vpow2.f32 %v117_v3  ;;  %v458_v13 = vmul.f32 2.0, %v453_v9  ;;  %v209_v16 = vsel %vm208_vm8, %v1089_v57, %v207_v8  ;;  %v165_v18 = vmul.f32 1.442695, %v164_v4 }
  0xb4   :  { %v292_v19 = vmul.f32 0.5, %v291_v12  ;;  %v332_v21 = vmul.f32 %v846_v5, %v1109_v26  ;;  %v212_v28 = vsel %vm210_vm9, %v211_v11, %v209_v16  ;;  %v244_v32 = vmul.f32 %v243_v20, %v1091_v58 }
  0xb5   :  { %v492_v10 = vpop.f32.mrf.mxu1  ;;  %v459_v23 = vsub.f32 %v1102_v22, %v458_v13  ;;  %v848_v29 = vpop.eup %847  ;;  %v1166_v22 = vadd.f32 %v550_v17, %v1141_v42  ;;  %853 = vpow2.f32 %v165_v18  ;;  %v213_v37 = vmul.f32 -0.5, %v212_v28 }
  0xb6   :  { %v502_v14 = vmul.f32 2.0, %v492_v10  ;;  %v293_v30 = vsub.f32 1.5, %v292_v19  ;;  %v333_v57 = vmul.f32 %v846_v5, %v332_v21  ;;  %v369_v35 = vmul.f32 %v848_v29, %v1135_v59 }
  0xb7   :  { %v1160_v34 = vmax.f32 %v459_v23, 0.0  ;;  %v246_v41 = vsel %vm245_vm10, %v1091_v58, %v244_v32  ;;  %v214_v53 = vmul.f32 1.442695, %v213_v37  ;;  %vm377_vm15 = vcmp.eq.f32.partialorder %v1135_v59, 0.0 }
  0xb8   :  { %v503_v27 = vsub.f32 %v501_v0, %v502_v14  ;;  %v1158_v33 = vpop.eup %849  ;;  %v294_v38 = vmul.f32 %v844_v63, %v293_v30  ;;  %v334_v39 = vmul.f32 0.5, %v333_v57  ;;  %v370_v44 = vmul.f32 %v848_v29, %v369_v35 }
  0xb9   :  { %v852_v36 = vpop.eup %851  ;;  %855 = vrsqrt.f32 %v1160_v34  ;;  %v425_v52 = vmul.f32 %v1158_v33, %v1137_v60  ;;  %v249_v56 = vsel %vm247_vm11, %v248_v48, %v246_v41  ;;  %v552_v0 = vrot.slane %v1166_v22, 2 }
  0xba   :  { %v1162_v24 = vmax.f32 %v503_v27, 0.0  ;;  %v120_v40 = vsel %vm119_vm2, %v852_v36, 0.0  ;;  %v455_v45 = vpop.f32.mrf.mxu0  ;;  %v295_v47 = vmul.f32 %v294_v38, %v1107_v25  ;;  %v371_v50 = vmul.f32 0.5, %v370_v44 }
  0xbb   :  { %121 = vadd.xlane.f32.xlu2 %v120_v40  ;;  %v335_v51 = vsub.f32 1.5, %v334_v39  ;;  %v854_v1 = vpop.eup %853  ;;  %vm338_vm0 = vcmp.eq.f32.partialorder %v1109_v26, inf  ;;  %v250_v4 = vmul.f32 -0.5, %v249_v56  ;;  %v426_v58 = vmul.f32 %v1158_v33, %v425_v52 }
  0xbc   :  { %857 = vrsqrt.f32 %v1162_v24  ;;  %v297_v55 = vsel %vm296_vm12, %v1107_v25, %v295_v47  ;;  %v372_v62 = vsub.f32 1.5, %v371_v50  ;;  %v378_v7 = vand.u32 2147483648, %v1135_v59 }
  0xbd   :  { %v494_v46 = vpop.f32.mrf.mxu1  ;;  %v300_v61 = vsel %vm298_vm13, %v299_v49, %v297_v55  ;;  %v336_v63 = vmul.f32 %v846_v5, %v335_v51  ;;  %859 = vpow2.f32 %v214_v53  ;;  %v167_v31 = vsel %vm119_vm2, %v854_v1, 0.0 }
  0xbe   :  { %v301_v2 = vmul.f32 -0.5, %v300_v61  ;;  %v373_v43 = vmul.f32 %v848_v29, %v372_v62  ;;  %v427_v11 = vmul.f32 0.5, %v426_v58  ;;  %v341_v13 = vand.u32 2147483648, %v1109_v26 }
  0xbf   :  { %v856_v3 = vpop.eup %855  ;;  %v337_v25 = vmul.f32 %v336_v63, %v1109_v26  ;;  %v251_v16 = vmul.f32 1.442695, %v250_v4  ;;  %vm340_vm1 = vcmp.eq.f32.partialorder %v1109_v26, 0.0  ;;  %v553_v29 = vadd.f32 %v552_v0, %v1166_v22 }
  0xc0   :  { %v302_v5 = vmul.f32 1.442695, %v301_v2  ;;  %v462_v8 = vmul.f32 %v856_v3, %v1160_v34  ;;  %v374_v9 = vmul.f32 %v373_v43, %v1135_v59  ;;  %v428_v19 = vsub.f32 1.5, %v427_v11 }
  0xc1   :  { %v339_v12 = vsel %vm338_vm0, %v1109_v26, %v337_v25  ;;  %vm468_vm4 = vcmp.eq.f32.partialorder %v1160_v34, inf  ;;  %vm431_vm5 = vcmp.eq.f32.partialorder %v1137_v60, inf  ;;  %v434_v36 = vand.u32 2147483648, %v1137_v60 }
  0xc2   :  { %v858_v6 = vpop.eup %857  ;;  %861 = vpow2.f32 %v302_v5  ;;  %v463_v14 = vmul.f32 %v856_v3, %v462_v8  ;;  %v376_v17 = vsel %vm375_vm14, %v1135_v59, %v374_v9  ;;  %v342_v27 = vsel %vm340_vm1, %v341_v13, %v339_v12  ;;  %v609_v13 = vpop.xlane.xlu2 %608 }
  0xc3   :  { %v506_v10 = vmul.f32 %v858_v6, %v1162_v24  ;;  %168 = vadd.xlane.f32.xlu2 %v167_v31  ;;  %v379_v20 = vsel %vm377_vm15, %v378_v7, %v376_v17  ;;  %v860_v30 = vpop.eup %859  ;;  %v429_v57 = vmul.f32 %v1158_v33, %v428_v19  ;;  %863 = vpow2.f32 %v251_v16  ;;  %v624_v16 = vpop.xlane.xlu0 %623 }
  0xc4   :  { %v464_v21 = vmul.f32 0.5, %v463_v14  ;;  %v380_v23 = vmul.f32 -0.5, %v379_v20  ;;  %v343_v37 = vmul.f32 -0.5, %v342_v27  ;;  %vm433_vm6 = vcmp.eq.f32.partialorder %v1137_v60, 0.0 }
  0xc5   :  { %v507_v18 = vmul.f32 %v858_v6, %v506_v10  ;;  %v430_v39 = vmul.f32 %v429_v57, %v1137_v60  ;;  %v216_v22 = vsel %vm119_vm2, %v860_v30, 0.0  ;;  %vm470_vm7 = vcmp.eq.f32.partialorder %v1160_v34, 0.0 }
  0xc6   :  { %v465_v32 = vsub.f32 1.5, %v464_v21  ;;  %v381_v35 = vmul.f32 1.442695, %v380_v23  ;;  %v471_v46 = vand.u32 2147483648, %v1160_v34  ;;  %v554_v49 = vrot.slane %v553_v29, 1  ;;  %v705_v21 = vpop.xlane.xlu1 %704 }
  0xc7   :  { %v508_v28 = vmul.f32 0.5, %v507_v18  ;;  %v432_v45 = vsel %vm431_vm5, %v1137_v60, %v430_v39  ;;  %v344_v50 = vmul.f32 1.442695, %v343_v37  ;;  %vm512_vm8 = vcmp.eq.f32.partialorder %v1162_v24, inf }
  0xc8   :  { %v862_v26 = vpop.eup %861  ;;  %v466_v38 = vmul.f32 %v856_v3, %v465_v32  ;;  %865 = vpow2.f32 %v381_v35  ;;  %v435_v48 = vsel %vm433_vm6, %v434_v36, %v432_v45  ;;  %v515_v52 = vand.u32 2147483648, %v1162_v24 }
  0xc9   :  { %v509_v59 = vsub.f32 1.5, %v508_v28  ;;  %v304_v40 = vsel %vm1097_vm3, 0.0, %v862_v26  ;;  %v864_v53 = vpop.eup %863  ;;  %vm514_vm9 = vcmp.eq.f32.partialorder %v1162_v24, 0.0  ;;  %v436_v56 = vmul.f32 -0.5, %v435_v48 }
  0xca   :  { %v305_v41 = vsel %vm119_vm2, %v304_v40, 0.0  ;;  %v467_v44 = vmul.f32 %v466_v38, %v1160_v34  ;;  %v1230_v1 = vadd.f32 %v554_v49, %v553_v29  ;;  %867 = vpow2.f32 %v344_v50  ;;  %v690_v18 = vpop.xlane.xlu2 %689 }
  0xcb   :  { %v510_v33 = vmul.f32 %v858_v6, %v509_v59  ;;  %217 = vadd.xlane.f32.xlu2 %v216_v22  ;;  %306 = vadd.xlane.f32.xlu0 %v305_v41  ;;  %v1235_v3 = vadd.f32 0.1, %v1087_v54  ;;  %v253_v4 = vsel %vm119_vm2, %v864_v53, 0.0  ;;  %v437_v25 = vmul.f32 1.442695, %v436_v56 }
  0xcc   :  { %v469_v51 = vsel %vm468_vm4, %v1160_v34, %v467_v44  ;;  %v610_v14 = vmax.f32 %v609_v13, 1e-24  ;;  %v625_v17 = vmax.f32 %v624_v16, 1e-24  ;;  %v691_v20 = vmax.f32 %v690_v18, 1e-24 }
  0xcd   :  { %v511_v47 = vmul.f32 %v510_v33, %v1162_v24  ;;  %v472_v55 = vsel %vm470_vm7, %v471_v46, %v469_v51  ;;  %v560_v58 = vsub.f32 %v1235_v3, %v1230_v1  ;;  %v706_v28 = vmax.f32 %v705_v21, 1e-24 }
  0xce   :  { %v473_v61 = vmul.f32 -0.5, %v472_v55  ;;  %v866_v63 = vpop.eup %865  ;;  %vm617_vm10 = vweird.f32 %v610_v14  ;;  %vm632_vm13 = vweird.f32 %v625_v17  ;;  %vm698_vm0 = vweird.f32 %v691_v20 }
  0xcf   :  { %v513_v60 = vsel %vm512_vm8, %v1162_v24, %v511_v47  ;;  %v383_v34 = vsel %vm1097_vm3, 0.0, %v866_v63  ;;  %vm713_vm5 = vweird.f32 %v706_v28  ;;  %vm257_vm8 = vcmask 3072  }
  0xd0   :  { %v516_v62 = vsel %vm514_vm9, %v515_v52, %v513_v60  ;;  %v474_v2 = vmul.f32 1.442695, %v473_v61  ;;  %v384_v24 = vsel %vm119_vm2, %v383_v34, 0.0  ;;  %v868_v6 = vpop.eup %867 }
  0xd1   :  { %v517_v0 = vmul.f32 -0.5, %v516_v62  ;;  %v346_v54 = vsel %vm119_vm2, %v868_v6, 0.0 }
  0xd2   :  { %869 = vpow2.f32 %v474_v2  ;;  %v639_v37 = vpop.xlane.xlu2 %638 }
  0xd3   :  { %v518_v43 = vmul.f32 1.442695, %v517_v0  ;;  %254 = vadd.xlane.f32.xlu2 %v253_v4  ;;  %385 = vadd.xlane.f32.xlu0 %v384_v24 }
  0xd5   :  { %871 = vpow2.f32 %v518_v43 }
  0xd6   :  { %873 = vpow2.f32 %v437_v25 }
  0xd7   :  { %875 = vrsqrt.f32 %v610_v14 }
  0xd8   :  { %v870_v5 = vpop.eup %869  ;;  %877 = vrsqrt.f32 %v625_v17 }
  0xd9   :  { %v476_v8 = vsel %vm119_vm2, %v870_v5, 0.0  ;;  %879 = vrsqrt.f32 %v691_v20 }
  0xda   :  { %477 = vadd.xlane.f32.xlu1 %v476_v8  ;;  %881 = vrsqrt.f32 %v706_v28  ;;  %v720_v48 = vpop.xlane.xlu2 %719 }
  0xdb   :  { %v872_v7 = vpop.eup %871  ;;  %347 = vadd.xlane.f32.xlu2 %v346_v54 }
  0xdc   :  { %v520_v31 = vsel %vm1097_vm3, 0.0, %v872_v7  ;;  %v874_v9 = vpop.eup %873  ;;  %v966_v7 = vmov 4.0  }
  0xdd   :  { %v521_v10 = vsel %vm119_vm2, %v520_v31, 0.0  ;;  %v439_v11 = vsel %vm1097_vm3, 0.0, %v874_v9  ;;  %v876_v19 = vpop.eup %875 }
  0xde   :  { %522 = vadd.xlane.f32.xlu0 %v521_v10  ;;  %v440_v12 = vsel %vm119_vm2, %v439_v11, 0.0  ;;  %v612_v23 = vmul.f32 %v876_v19, %v610_v14  ;;  %v878_v27 = vpop.eup %877  ;;  %vm618_vm11 = vweird.f32 %v876_v19 }
  0xdf   :  { %v627_v30 = vmul.f32 %v878_v27, %v625_v17  ;;  %v880_v32 = vpop.eup %879  ;;  %vm619_vm12 = vmor %vm617_vm10, %vm618_vm11  ;;  %vm633_vm14 = vweird.f32 %v878_v27 }
  0xe0   :  { %v613_v29 = vmul.f32 %v876_v19, %v612_v23  ;;  %v693_v35 = vmul.f32 %v880_v32, %v691_v20  ;;  %v882_v59 = vpop.eup %881  ;;  %vm634_vm15 = vmor %vm632_vm13, %vm633_vm14  ;;  %vm699_vm1 = vweird.f32 %v880_v32 }
  0xe1   :  { %v628_v57 = vmul.f32 %v878_v27, %v627_v30  ;;  %v708_v39 = vmul.f32 %v882_v59, %v706_v28  ;;  %vm700_vm4 = vmor %vm698_vm0, %vm699_vm1  ;;  %vm714_vm6 = vweird.f32 %v882_v59 }
  0xe2   :  { %441 = vadd.xlane.f32.xlu1 %v440_v12  ;;  %v694_v38 = vmul.f32 %v880_v32, %v693_v35  ;;  %vm715_vm7 = vmor %vm713_vm5, %vm714_vm6 }
  0xe3   :  { %548 = vadd.xlane.f32.xlu2 %v1141_v42  ;;  %v614_v42 = vmul.f32 0.5, %v613_v29  ;;  %v629_v36 = vmul.f32 0.5, %v628_v57  ;;  %v709_v41 = vmul.f32 %v882_v59, %v708_v39 }
  0xe4   :  { %v695_v33 = vmul.f32 0.5, %v694_v38 }
  0xe5   :  { %v615_v26 = vsub.f32 1.5, %v614_v42  ;;  %v630_v22 = vsub.f32 1.5, %v629_v36  ;;  %v710_v46 = vmul.f32 0.5, %v709_v41 }
  0xe6   :  { %v696_v47 = vsub.f32 1.5, %v695_v33 }
  0xe7   :  { %v616_v40 = vmul.f32 %v876_v19, %v615_v26  ;;  %v631_v45 = vmul.f32 %v878_v27, %v630_v22  ;;  %v711_v51 = vsub.f32 1.5, %v710_v46 }
  0xe8   :  { %v697_v52 = vmul.f32 %v880_v32, %v696_v47 }
  0xe9   :  { %v620_v44 = vsel %vm619_vm12, %v876_v19, %v616_v40  ;;  %v635_v50 = vsel %vm634_vm15, %v878_v27, %v631_v45  ;;  %v712_v60 = vmul.f32 %v882_v59, %v711_v51 }
  0xea   :  { %v640_v49 = vmul.f32 %v639_v37, %v620_v44  ;;  %v701_v55 = vsel %vm700_vm4, %v880_v32, %v697_v52 }
  0xeb   :  { %v721_v62 = vmul.f32 %v720_v48, %v701_v55  ;;  %v716_v63 = vsel %vm715_vm7, %v882_v59, %v712_v60  ;;  %v561_v59 = vmax.f32 %v560_v58, 0.0 }
  0xec   :  { %v641_v53 = vmul.f32 %v640_v49, %v635_v50 }
  0xed   :  { %v722_v34 = vmul.f32 %v721_v62, %v716_v63  ;;  %v562_v44 = vsel %vm1097_vm3, 0.0, %v561_v59 }
  0xee   :  { %v642_v61 = vmul.f32 %v641_v53, %v641_v53  ;;  %v582_v49 = vsel %vm119_vm2, %v562_v44, 0.0 }
  0xef   :  { %v723_v4 = vmul.f32 %v722_v34, %v722_v34  ;;  %v967_v34 = vmov 64.0  }
  0xf0   :  { %v643_v0 = vmul.f32 2.0, %v642_v61 }
  0xf1   :  { %v1250_v25 = vmul.f32 2.0, %v723_v4 }
  0xf2   :  { %883 = vrsqrt.f32 %v643_v0  ;;  %vm652_vm9 = vcmp.eq.f32.partialorder %v643_v0, inf  ;;  %v655_v22 = vand.u32 2147483648, %v643_v0  ;;  %vm654_vm10 = vcmp.eq.f32.partialorder %v643_v0, 0.0 }
  0xf3   :  { %885 = vrsqrt.f32 %v1250_v25  ;;  %vm733_vm12 = vcmp.eq.f32.partialorder %v1250_v25, inf  ;;  %v736_v53 = vand.u32 2147483648, %v1250_v25 }
  0xf4   :  { %887 = vrcp.f32 %v966_v7 }
  0xf5   :  { %889 = vrcp.f32 %v967_v34 }
  0xf8   :  { %v884_v43 = vpop.eup %883 }
  0xf9   :  { %v646_v6 = vmul.f32 %v884_v43, %v643_v0  ;;  %v886_v31 = vpop.eup %885 }
  0xfa   :  { %v888_v10 = vpop.eup %887  ;;  %v727_v11 = vmul.f32 %v886_v31, %v1250_v25 }
  0xfb   :  { %v647_v54 = vmul.f32 %v884_v43, %v646_v6  ;;  %v658_v13 = vmul.f32 4.0, %v888_v10  ;;  %vm662_vm11 = vweird.f32 %v888_v10 }
  0xfc   :  { %v728_v18 = vmul.f32 %v886_v31, %v727_v11 }
  0xfd   :  { %v648_v9 = vmul.f32 0.5, %v647_v54  ;;  %v659_v21 = vsub.f32 1.0, %v658_v13 }
  0xfe   :  { %v729_v27 = vmul.f32 0.5, %v728_v18 }
  0xff   :  { %v649_v12 = vsub.f32 1.5, %v648_v9  ;;  %v660_v30 = vmul.f32 %v888_v10, %v659_v21 }
 0x100   :  { %v730_v36 = vsub.f32 1.5, %v729_v27 }
 0x101   :  { %v650_v20 = vmul.f32 %v884_v43, %v649_v12  ;;  %v661_v40 = vadd.f32 %v888_v10, %v660_v30 }
 0x102   :  { %v731_v45 = vmul.f32 %v886_v31, %v730_v36 }
 0x103   :  { %v651_v29 = vmul.f32 %v650_v20, %v643_v0  ;;  %v1265_v48 = vsel %vm662_vm11, %v888_v10, %v661_v40 }
 0x104   :  { %v732_v51 = vmul.f32 %v731_v45, %v1250_v25 }
 0x105   :  { %v653_v39 = vsel %vm652_vm9, %v643_v0, %v651_v29 }
 0x106   :  { %v656_v47 = vsel %vm654_vm10, %v655_v22, %v653_v39  ;;  %v734_v55 = vsel %vm733_vm12, %v1250_v25, %v732_v51 }
 0x107   :  { %v664_v52 = vmul.f32 %v1265_v48, %v656_v47 }
 0x109   :  { %v665_v60 = vsel %vm257_vm8, %v664_v52, 0.0 }
 0x12e   :  { %v122_v56 = vpop.xlane.xlu2 %121 }
 0x136   :  { %v169_v2 = vpop.xlane.xlu2 %168 }
 0x137   :  { %v170_v58 = vadd.f32 %v169_v2, %v122_v56  ;;  %v968_v2 = vmov 16.0  }
 0x138   :  { %891 = vrcp.f32 %v968_v2 }
 0x13e   :  { %v218_v24 = vpop.xlane.xlu2 %217  ;;  %v307_v5 = vpop.xlane.xlu0 %306 }
 0x13f   :  { %v219_v50 = vadd.f32 %v218_v24, %v170_v58  ;;  %v890_v24 = vpop.eup %889 }
 0x140   :  { %v892_v54 = vpop.eup %891  ;;  %v538_v31 = vmul.f32 64.0, %v890_v24 }
 0x141   :  { %v574_v13 = vmul.f32 16.0, %v892_v54  ;;  %vm578_vm13 = vweird.f32 %v892_v54 }
 0x142   :  { %v539_v18 = vsub.f32 1.0, %v538_v31 }
 0x143   :  { %v575_v29 = vsub.f32 1.0, %v574_v13 }
 0x146   :  { %v255_v8 = vpop.xlane.xlu2 %254  ;;  %v386_v14 = vpop.xlane.xlu0 %385 }
 0x147   :  { %v256_v15 = vadd.f32 %v255_v8, %v219_v50 }
 0x149   :  { %v258_v56 = vsel %vm257_vm8, %v256_v15, 0.0 }
 0x14d   :  { %v478_v17 = vpop.xlane.xlu1 %477 }
 0x14e   :  { %v348_v16 = vpop.xlane.xlu2 %347  ;;  %v479_v32 = vmul.f32 2.0, %v478_v17 }
 0x14f   :  { %v349_v19 = vmul.f32 2.0, %v348_v16 }
 0x151   :  { %v350_v23 = vadd.f32 %v349_v19, %v307_v5  ;;  %v523_v38 = vpop.xlane.xlu0 %522 }
 0x153   :  { %v387_v28 = vadd.f32 %v386_v14, %v350_v23 }
 0x155   :  { %v388_v42 = vsel %vm257_vm8, %v387_v28, 0.0  ;;  %v442_v35 = vpop.xlane.xlu1 %441 }
 0x156   :  { %v549_v57 = vpop.xlane.xlu2 %548  ;;  %389 = vadd.xlane.f32.xlu2 %v388_v42  ;;  %v480_v37 = vadd.f32 %v479_v32, %v442_v35  ;;  %v540_v42 = vmul.f32 %v890_v24, %v539_v18 }
 0x157   :  { %v557_v26 = vsub.f32 %v1235_v3, %v549_v57 }
 0x158   :  { %v524_v41 = vadd.f32 %v523_v38, %v480_v37  ;;  %v576_v37 = vmul.f32 %v892_v54, %v575_v29  ;;  %v541_v40 = vadd.f32 %v890_v24, %v540_v42 }
 0x159   :  { %v558_v33 = vmax.f32 %v557_v26, 0.0 }
 0x15a   :  { %v525_v46 = vsel %vm257_vm8, %v524_v41, 0.0 }
 0x15b   :  { %v559_v1 = vsel %vm1097_vm3, 0.0, %v558_v33  ;;  %526 = vadd.xlane.f32.xlu0 %v525_v46  ;;  %vm735_vm3 = vcmp.eq.f32.partialorder %v1250_v25, 0.0 }
 0x15c   :  { %v563_v3 = vsel %vm119_vm2, %v559_v1, 0.0  ;;  %v737_v61 = vsel %vm735_vm3, %v736_v53, %v734_v55  ;;  %vm542_vm2 = vweird.f32 %v890_v24 }
 0x15d   :  { %564 = vadd.xlane.f32.xlu1 %v563_v3  ;;  %v738_v62 = vmul.f32 %v737_v61, %v1265_v48  ;;  %v577_v3 = vadd.f32 %v892_v54, %v576_v37  ;;  %v543_v52 = vsel %vm542_vm2, %v890_v24, %v541_v40 }
 0x15e   :  { %583 = vadd.xlane.f32.xlu2 %v582_v49 }
 0x15f   :  { %v739_v63 = vsel %vm257_vm8, %v738_v62, 0.0 }
 0x163   :  { %666 = vadd.xlane.f32.xlu0 %v665_v60  ;;  %v579_v60 = vsel %vm578_vm13, %v892_v54, %v577_v3 }
 0x165   :  { %259 = vadd.xlane.f32.xlu1 %v258_v56 }
 0x16d   :  { %740 = vadd.xlane.f32.xlu1 %v739_v63 }
 0x1c9   :  { %v390_v0 = vpop.xlane.xlu2 %389 }
 0x1ca   :  { %v391_v43 = vrot.slane %v390_v0, 4 }
 0x1cc   :  { %v392_v8 = vadd.f32 %v391_v43, %v390_v0 }
 0x1ce   :  { %v527_v4 = vpop.xlane.xlu0 %526  ;;  %v393_v14 = vrot.slane %v392_v8, 2 }
 0x1cf   :  { %v528_v6 = vrot.slane %v527_v4, 4 }
 0x1d0   :  { %v565_v25 = vpop.xlane.xlu1 %564  ;;  %v394_v32 = vadd.f32 %v393_v14, %v392_v8 }
 0x1d1   :  { %v584_v5 = vpop.xlane.xlu2 %583  ;;  %v566_v7 = vrot.slane %v565_v25, 4  ;;  %v529_v9 = vadd.f32 %v528_v6, %v527_v4 }
 0x1d2   :  { %v585_v10 = vrot.slane %v584_v5, 4  ;;  %v395_v22 = vrot.slane %v394_v32, 1 }
 0x1d3   :  { %v567_v11 = vadd.f32 %v566_v7, %v565_v25  ;;  %v530_v19 = vrot.slane %v529_v9, 2 }
 0x1d4   :  { %v586_v20 = vadd.f32 %v585_v10, %v584_v5  ;;  %v396_v47 = vadd.f32 %v395_v22, %v394_v32 }
 0x1d5   :  { %v568_v27 = vrot.slane %v567_v11, 2  ;;  %v531_v59 = vadd.f32 %v530_v19, %v529_v9 }
 0x1d6   :  { %v667_v12 = vpop.xlane.xlu0 %666  ;;  %v587_v57 = vrot.slane %v586_v20, 2 }
 0x1d7   :  { %v668_v16 = vrot.slane %v667_v12, 4  ;;  %v569_v26 = vadd.f32 %v568_v27, %v567_v11  ;;  %v532_v45 = vrot.slane %v531_v59, 1 }
 0x1d8   :  { %v260_v17 = vpop.xlane.xlu1 %259  ;;  %v588_v33 = vadd.f32 %v587_v57, %v586_v20 }
 0x1d9   :  { %v261_v21 = vrot.slane %v260_v17, 4  ;;  %v669_v23 = vadd.f32 %v668_v16, %v667_v12  ;;  %v570_v58 = vrot.slane %v569_v26, 1  ;;  %v533_v51 = vadd.f32 %v532_v45, %v531_v59 }
 0x1da   :  { %v589_v15 = vrot.slane %v588_v33, 1 }
 0x1db   :  { %v262_v28 = vadd.f32 %v261_v21, %v260_v17  ;;  %v670_v30 = vrot.slane %v669_v23, 2  ;;  %v571_v55 = vadd.f32 %v570_v58, %v569_v26 }
 0x1dc   :  { %v590_v61 = vadd.f32 %v589_v15, %v588_v33 }
 0x1dd   :  { %v263_v35 = vrot.slane %v262_v28, 2  ;;  %v671_v38 = vadd.f32 %v670_v30, %v669_v23 }
 0x1df   :  { %v264_v36 = vadd.f32 %v263_v35, %v262_v28  ;;  %v672_v49 = vrot.slane %v671_v38, 1 }
 0x1e0   :  { %v741_v39 = vpop.xlane.xlu1 %740 }
 0x1e1   :  { %v742_v41 = vrot.slane %v741_v39, 4  ;;  %v265_v44 = vrot.slane %v264_v36, 1  ;;  %v673_v56 = vadd.f32 %v672_v49, %v671_v38 }
 0x1e3   :  { %v743_v46 = vadd.f32 %v742_v41, %v741_v39  ;;  %v266_v1 = vadd.f32 %v265_v44, %v264_v36 }
 0x1e5   :  { %v744_v50 = vrot.slane %v743_v46, 2  ;;  %798 = vpush %v266_v1 }
 0x1e6   :  { %800 = vpush %v396_v47 }
 0x1e7   :  { %v745_v53 = vadd.f32 %v744_v50, %v743_v46  ;;  %802 = vpush %v533_v51 }
 0x1e8   :  { %804 = vpush %v543_v52 }
 0x1e9   :  { %806 = vpush %v571_v55  ;;  %v746_v62 = vrot.slane %v745_v53, 1 }
 0x1ea   :  { %808 = vpush %v579_v60 }
 0x1eb   :  { %810 = vpush %v590_v61  ;;  %v747_v63 = vadd.f32 %v746_v62, %v745_v53 }
 0x1ec   :  { %812 = vpush %v673_v56 }
 0x1ed   :  { %814 = vpush %v1265_v48 }
 0x1ee   :  { %816 = vpush %v747_v63 }
 0x216   :  { %s799_s5 = spop %798 }
 0x217   :  { %s399_s14 = smul.f32 2.0, %s799_s5  ;;  %s801_s15 = spop %800 }
 0x218   :  { %s398_s16 = sadd.f32 8.0, %s801_s15  ;;  %s803_s17 = spop %802 }
 0x219   :  { %s535_s18 = sadd.f32 8.0, %s803_s17  ;;  %s805_s1 = spop %804 }
 0x21a   :  { %s400_s3 = ssub.f32 %s398_s16, %s399_s14  ;;  %s807_s19 = spop %806 }
 0x21b   :  { %s809_s20 = spop %808 }
 0x21c   :  { %s536_s21 = sadd.f32 %s535_s18, %s400_s3  ;;  %s581_s24 = smul.f32 %s809_s20, %s807_s19 }
 0x21d   :  { %s811_s25 = spop %810 }
 0x21e   :  { %s545_s26 = smul.f32 %s805_s1, %s536_s21  ;;  %s813_s27 = spop %812 }
 0x21f   :  { %s600_s2 = smul.f32 %s811_s25, %s809_s20  ;;  %s815_s28 = spop %814 }
 0x220   :  { %764 = sst [smem:[#allocation7 + $0x2]] %s545_s26  ;;  %s683_s29 = smul.f32 %s815_s28, %s813_s27 }
 0x221   :  { %s601_s30 = sadd.f32 %s600_s2, %s581_s24  ;;  %s817_s4 = spop %816 }
 0x222   :  { %s757_s9 = smul.f32 %s817_s4, %s815_s28 }
 0x223   :  { %760 = sst [smem:[#allocation7]] %s601_s30 }
 0x224   :  { %s758_s10 = sadd.f32 %s757_s9, %s683_s29 }
 0x226   :  { %762 = sst [smem:[#allocation7 + $0x1]] %s758_s10 }
 0x227   :  { %773 = dma.smem_to_hbm %s969_s11, 16, %s771_s23, [#allocation4]  }
 0x228   :  { %957 = dma.done.wait [#allocation4], 16  }
 0x229   :  { %958 = vsyncadd [#allocation4], 4294967280 }
 0x22a   :  { %778 = sfence }
 0x22b   :  { %779 = vsyncpa [#allocation3], 1 }
 0x22c   :  { %780 = vsyncpa [#allocation6], 1 }
 0x22d   :  { %781 = vsyncpa [#allocation4], 1 }

</bundles_post_ra>
